<compile_context>
chip_gen: v7x
topology: tpu7x:2x2x1
jax: 0.10.0
libtpu: 0.0.40
codegen_flags: <defaults>
</compile_context>

<pallas_src>
import jax
import jax.numpy as jnp
from jax.experimental import pallas as pl
from jax.experimental.pallas import tpu as pltpu


def _round_up(x, m):
    return ((x + m - 1) // m) * m


def make_gcn_kernel(a_resident: bool, tm: int):
    """Kernel factory; `a_resident` selects whole-A-in-VMEM vs streamed row slabs."""

    def kernel(a_ref, d_ref, w2_ref, b2_ref, wfc_ref, bfc_ref, o_ref, z_scratch):
        phase = pl.program_id(0)   # 0: build Z scratch, 1: aggregate + FC head
        i = pl.program_id(1)       # row-tile index
        row = pl.multiple_of(i * tm, tm)

        def a_rows():
            # (TM, Np) row slab of A_hat for this tile.
            if a_resident:
                return a_ref[pl.ds(row, tm), :]   # slice of the VMEM-resident A
            return a_ref[...]                     # streamed slab

        # Phase 0: Z[tile] = relu(A[tile] @ D) @ W2 + b2  -> persistent VMEM scratch.
        @pl.when(phase == 0)
        def _():
            h1 = jnp.dot(a_rows(), d_ref[...], preferred_element_type=jnp.float32)
            h1 = jnp.maximum(h1, 0.0).astype(jnp.bfloat16)
            z = jnp.dot(h1, w2_ref[...], preferred_element_type=jnp.float32) + b2_ref[...]
            z_scratch[pl.ds(row, tm), :] = z.astype(z_scratch.dtype)

        # Phase 1: out[tile] = relu(A[tile] @ Z) @ Wfc + bfc.  Output stored only here.
        @pl.when(phase == 1)
        def _():
            h2 = jnp.dot(a_rows(), z_scratch[...], preferred_element_type=jnp.float32)
            h2 = jnp.maximum(h2, 0.0).astype(jnp.bfloat16)
            out = jnp.dot(h2, wfc_ref[...], preferred_element_type=jnp.float32) + bfc_ref[...]
            o_ref[...] = out.astype(o_ref.dtype)

    return kernel


def gcn_forward(X, A_hat, W1, b1, W2, b2, Wfc, bfc, *, tm=256):
    """Fused GCN aggregation.  Weights in math layout: W1:[F,H1] W2:[H1,H2] Wfc:[H2,C]."""
    N, _ = X.shape
    H1 = W1.shape[1]
    H2 = W2.shape[1]
    C = Wfc.shape[1]

    TM = min(tm, _round_up(N, 128))
    Np = _round_up(N, TM)
    H1p, H2p, Cp = (_round_up(d, 128) for d in (H1, H2, C))
    n_tiles = Np // TM

    def pad2(m, r, c):
        return jnp.pad(m, ((0, r - m.shape[0]), (0, c - m.shape[1])))

    # Layer-1 dense (tiny N x F x H1 matmul) in f32 in the wrapper; the expensive
    # N x N aggregations stay fused in the kernel.  Padded rows of D are exactly 0.
    D = X.astype(jnp.float32) @ W1.astype(jnp.float32) + b1.astype(jnp.float32)

    # bf16 MXU operands (f32 accumulation in-kernel); f32 biases.
    # Correctness relies on the zero padding of A_hat's extra rows/columns.
    Ap = pad2(A_hat, Np, Np).astype(jnp.bfloat16)
    Dp = pad2(D, Np, H1p).astype(jnp.bfloat16)
    W2p = pad2(W2, H1p, H2p).astype(jnp.bfloat16)
    Wfcp = pad2(Wfc, H2p, Cp).astype(jnp.bfloat16)
    b2p = pad2(b2.reshape(1, -1), 1, H2p).astype(jnp.float32)
    bfcp = pad2(bfc.reshape(1, -1), 1, Cp).astype(jnp.float32)

    # ---- VMEM budgeting: A_hat resident (single HBM stream) when it fits. ----
    try:
        vmem_cap = int(pltpu.get_tpu_info().vmem_capacity_bytes)
    except Exception:
        vmem_cap = 64 * 1024 * 1024            # conservative (v7x-sized) fallback

    bytes_a = Np * Np * 2
    bytes_d = Np * H1p * 2
    bytes_z = Np * H2p * 2
    bytes_w = (H1p * H2p + H2p * Cp) * 2 + (H2p + Cp) * 4
    bytes_out = 2 * TM * Cp * 4                # double-buffered output tile
    resident_need = bytes_a + bytes_d + bytes_z + bytes_w + bytes_out
    a_resident = resident_need <= int(0.7 * vmem_cap)

    if a_resident:
        need = resident_need
        a_bytes_streamed = bytes_a             # A DMA'd from HBM exactly once
    else:
        # TODO(synk): replace the (TM, Np) slab fallback with K-tiled accumulation.
        need = 2 * TM * Np * 2 + bytes_d + bytes_z + bytes_w + bytes_out
        a_bytes_streamed = 2 * bytes_a         # streamed in both phases

    vmem_limit = int(min(vmem_cap, max(need + (8 << 20), 32 << 20)))

    flops = (2 * Np * Np * H1p + 2 * Np * H1p * H2p
             + 2 * Np * Np * H2p + 2 * Np * H2p * Cp)
    bytes_accessed = a_bytes_streamed + bytes_d + bytes_w + Np * Cp * 4

    kernel = make_gcn_kernel(a_resident, TM)

    def build(single_buffer_consts):
        pm = {"pipeline_mode": pl.Buffered(1)} if single_buffer_consts else {}

        def const(shape):
            return pl.BlockSpec(shape, lambda p, i: (0,) * len(shape), **pm)

        if a_resident:
            a_spec = const((Np, Np))                          # VMEM-resident A_hat
        else:
            a_spec = pl.BlockSpec((TM, Np), lambda p, i: (i, 0))   # streamed slabs

        return pl.pallas_call(
            kernel,
            out_shape=jax.ShapeDtypeStruct((Np, Cp), jnp.float32),
            grid_spec=pltpu.PrefetchScalarGridSpec(
                num_scalar_prefetch=0,
                grid=(2, n_tiles),                             # (phase, row tile)
                in_specs=[
                    a_spec,                                    # A_hat
                    const((Np, H1p)),                          # D = X@W1 + b1
                    const((H1p, H2p)), const((1, H2p)),        # W2, b2
                    const((H2p, Cp)), const((1, Cp)),          # Wfc, bfc
                ],
                # Phase 0 never stores the output; aliasing every phase-0 step to
                # block 0 means each output tile is written to HBM exactly once
                # (by its phase-1 step).
                out_specs=pl.BlockSpec((TM, Cp), lambda p, i: (i * p, 0)),
                scratch_shapes=[
                    pltpu.VMEM((Np, H2p), jnp.bfloat16),       # Z = relu(A@D)@W2 + b2
                ],
            ),
            compiler_params=pltpu.CompilerParams(
                # Phase 1 reads Z rows written by every phase-0 tile -> sequential.
                # TODO(synk): two-pallas_call split with a "parallel" tile axis for
                # v7x megacore (costs one extra A stream).
                dimension_semantics=("arbitrary", "arbitrary"),
                vmem_limit_bytes=vmem_limit,
            ),
            cost_estimate=pl.CostEstimate(
                flops=flops, transcendentals=0, bytes_accessed=bytes_accessed),
        )

    try:
        out = build(True)(Ap, Dp, W2p, b2p, Wfcp, bfcp)
    except Exception:
        # pl.Buffered(1) not supported by this runtime -> default double buffering.
        out = build(False)(Ap, Dp, W2p, b2p, Wfcp, bfcp)

    return out[:N, :C]


def reference_forward(X, A_hat, W1, b1, W2, b2, Wfc, bfc):
    h = jnp.maximum(A_hat @ (X @ W1 + b1), 0.0)
    h = jnp.maximum(A_hat @ (h @ W2 + b2), 0.0)
    return h @ Wfc + bfc


if __name__ == "__main__":
    # Small shapes consistent with the PyTorch module.
    N = 64          # number of graph nodes
    X_size = 32     # input feature dim
    H1 = 32         # args.hidden_size_1
    H2 = 32         # args.hidden_size_2
    C = 8           # args.num_classes

    key = jax.random.PRNGKey(0)
    kx, ka, kw1, kb1, kw2, kb2, kwf, kbf = jax.random.split(key, 8)

    # Node features.
    X = jax.random.normal(kx, (N, X_size), dtype=jnp.float32)

    # Deterministic symmetric-normalized adjacency A_hat = D^-1/2 (A+I) D^-1/2.
    A = (jax.random.uniform(ka, (N, N)) < 0.1).astype(jnp.float32)
    A = jnp.maximum(A, A.T) + jnp.eye(N, dtype=jnp.float32)
    deg = jnp.sum(A, axis=1)
    d_inv_sqrt = 1.0 / jnp.sqrt(deg)
    A_hat = A * d_inv_sqrt[:, None] * d_inv_sqrt[None, :]

    # Parameters, initialized like the module (normal with std = 2/(fan_in+fan_out)).
    var1 = 2.0 / (X_size + H1)
    var2 = 2.0 / (H1 + H2)
    W1 = var1 * jax.random.normal(kw1, (X_size, H1), dtype=jnp.float32)
    b1 = var1 * jax.random.normal(kb1, (H1,), dtype=jnp.float32)
    W2 = var2 * jax.random.normal(kw2, (H1, H2), dtype=jnp.float32)
    b2 = var2 * jax.random.normal(kb2, (H2,), dtype=jnp.float32)
    # fc1: nn.Linear(H2, C) -> weight [C, H2]; stored pre-transposed as [H2, C].
    Wfc = (0.1 * jax.random.normal(kwf, (C, H2), dtype=jnp.float32)).T
    bfc = 0.1 * jax.random.normal(kbf, (C,), dtype=jnp.float32)

    out = gcn_forward(X, A_hat, W1, b1, W2, b2, Wfc, bfc)
    out = jax.block_until_ready(out)

    ref = reference_forward(X, A_hat, W1, b1, W2, b2, Wfc, bfc)
    assert out.shape == (N, C)
    max_err = float(jnp.max(jnp.abs(out - ref)))
    # bf16 matmul inputs with f32 accumulation -> loosened tolerance vs f32 reference.
    assert jnp.allclose(out, ref, atol=2e-2, rtol=2e-2), f"max abs err {max_err}"
    print("KERNEL_OK")
</pallas_src>

<mosaic_0001>
module attributes {stable_mosaic.version = 11 : i64} {
  func.func @kernel(%arg0: i32, %arg1: i32, %arg2: memref<128x128xbf16, #tpu.memory_space<vmem>>, %arg3: memref<128x128xbf16, #tpu.memory_space<vmem>>, %arg4: memref<128x128xbf16, #tpu.memory_space<vmem>>, %arg5: memref<1x128xf32, #tpu.memory_space<vmem>>, %arg6: memref<128x128xbf16, #tpu.memory_space<vmem>>, %arg7: memref<1x128xf32, #tpu.memory_space<vmem>>, %arg8: memref<128x128xf32, #tpu.memory_space<vmem>>, %arg9: memref<128x128xbf16, #tpu.memory_space<vmem>>) attributes {dimension_semantics = [#tpu.dimension_semantics<arbitrary>, #tpu.dimension_semantics<arbitrary>], iteration_bounds = array<i64: 2, 1>, scalar_prefetch = 0 : i64, scratch_operands = 1 : i64, tpu.core_type = #tpu.core_type<tc>, window_params = [{pipeline_mode = #tpu.pipeline_mode<synchronous>, transform_indices = @transform_0, window_bounds = array<i64: 128, 128>}, {pipeline_mode = #tpu.pipeline_mode<synchronous>, transform_indices = @transform_1, window_bounds = array<i64: 128, 128>}, {pipeline_mode = #tpu.pipeline_mode<synchronous>, transform_indices = @transform_2, window_bounds = array<i64: 128, 128>}, {pipeline_mode = #tpu.pipeline_mode<synchronous>, transform_indices = @transform_3, window_bounds = array<i64: 1, 128>}, {pipeline_mode = #tpu.pipeline_mode<synchronous>, transform_indices = @transform_4, window_bounds = array<i64: 128, 128>}, {pipeline_mode = #tpu.pipeline_mode<synchronous>, transform_indices = @transform_5, window_bounds = array<i64: 1, 128>}, {transform_indices = @transform_6, window_bounds = array<i64: 128, 128>}]} {
    %c128_i32 = arith.constant 128 : i32
    %0 = arith.muli %arg1, %c128_i32 : i32
    %1 = tpu.assume_multiple %0, 128 : i32
    %c0_i32 = arith.constant 0 : i32
    %2 = arith.cmpi eq, %arg0, %c0_i32 : i32
    %3 = arith.extui %2 : i1 to i32
    %c0_i32_0 = arith.constant 0 : i32
    %4 = arith.cmpi ne, %3, %c0_i32_0 : i32
    scf.if %4 {
      %8 = arith.index_cast %1 : i32 to index
      %c0 = arith.constant 0 : index
      %9 = vector.load %arg2[%8, %c0] : memref<128x128xbf16, #tpu.memory_space<vmem>>, vector<128x128xbf16>
      %c0_2 = arith.constant 0 : index
      %c0_3 = arith.constant 0 : index
      %10 = vector.load %arg3[%c0_2, %c0_3] : memref<128x128xbf16, #tpu.memory_space<vmem>>, vector<128x128xbf16>
      %cst = arith.constant dense<0.000000e+00> : vector<128x128xf32>
      %11 = tpu.matmul %9, %10, %cst {dimension_numbers = #tpu.dot_dimension_numbers<[1], [0], [0], [1], [0, 0, 1, 1], [], []>} : vector<128x128xbf16>, vector<128x128xbf16>, vector<128x128xf32> -> vector<128x128xf32>
      %cst_4 = arith.constant 0.000000e+00 : f32
      %12 = vector.broadcast %cst_4 : f32 to vector<128x128xf32>
      %13 = arith.maximumf %11, %12 : vector<128x128xf32>
      %14 = arith.truncf %13 : vector<128x128xf32> to vector<128x128xbf16>
      %c0_5 = arith.constant 0 : index
      %c0_6 = arith.constant 0 : index
      %15 = vector.load %arg4[%c0_5, %c0_6] : memref<128x128xbf16, #tpu.memory_space<vmem>>, vector<128x128xbf16>
      %cst_7 = arith.constant dense<0.000000e+00> : vector<128x128xf32>
      %16 = tpu.matmul %14, %15, %cst_7 {dimension_numbers = #tpu.dot_dimension_numbers<[1], [0], [0], [1], [0, 0, 1, 1], [], []>} : vector<128x128xbf16>, vector<128x128xbf16>, vector<128x128xf32> -> vector<128x128xf32>
      %c0_8 = arith.constant 0 : index
      %c0_9 = arith.constant 0 : index
      %17 = vector.load %arg5[%c0_8, %c0_9] : memref<1x128xf32, #tpu.memory_space<vmem>>, vector<1x128xf32>
      %18 = vector.broadcast %17 : vector<1x128xf32> to vector<128x128xf32>
      %19 = arith.addf %16, %18 : vector<128x128xf32>
      %20 = arith.truncf %19 : vector<128x128xf32> to vector<128x128xbf16>
      %21 = arith.index_cast %1 : i32 to index
      %c0_10 = arith.constant 0 : index
      %22 = vector.load %arg9[%21, %c0_10] : memref<128x128xbf16, #tpu.memory_space<vmem>>, vector<128x128xbf16>
      tpu.vector_store %arg9[%21, %c0_10], %20 {strides = array<i32>} : memref<128x128xbf16, #tpu.memory_space<vmem>>, vector<128x128xbf16>,
    } else {
    }
    %c1_i32 = arith.constant 1 : i32
    %5 = arith.cmpi eq, %arg0, %c1_i32 : i32
    %6 = arith.extui %5 : i1 to i32
    %c0_i32_1 = arith.constant 0 : i32
    %7 = arith.cmpi ne, %6, %c0_i32_1 : i32
    scf.if %7 {
      %8 = arith.index_cast %1 : i32 to index
      %c0 = arith.constant 0 : index
      %9 = vector.load %arg2[%8, %c0] : memref<128x128xbf16, #tpu.memory_space<vmem>>, vector<128x128xbf16>
      %c0_2 = arith.constant 0 : index
      %c0_3 = arith.constant 0 : index
      %10 = vector.load %arg9[%c0_2, %c0_3] : memref<128x128xbf16, #tpu.memory_space<vmem>>, vector<128x128xbf16>
      %cst = arith.constant dense<0.000000e+00> : vector<128x128xf32>
      %11 = tpu.matmul %9, %10, %cst {dimension_numbers = #tpu.dot_dimension_numbers<[1], [0], [0], [1], [0, 0, 1, 1], [], []>} : vector<128x128xbf16>, vector<128x128xbf16>, vector<128x128xf32> -> vector<128x128xf32>
      %cst_4 = arith.constant 0.000000e+00 : f32
      %12 = vector.broadcast %cst_4 : f32 to vector<128x128xf32>
      %13 = arith.maximumf %11, %12 : vector<128x128xf32>
      %14 = arith.truncf %13 : vector<128x128xf32> to vector<128x128xbf16>
      %c0_5 = arith.constant 0 : index
      %c0_6 = arith.constant 0 : index
      %15 = vector.load %arg6[%c0_5, %c0_6] : memref<128x128xbf16, #tpu.memory_space<vmem>>, vector<128x128xbf16>
      %cst_7 = arith.constant dense<0.000000e+00> : vector<128x128xf32>
      %16 = tpu.matmul %14, %15, %cst_7 {dimension_numbers = #tpu.dot_dimension_numbers<[1], [0], [0], [1], [0, 0, 1, 1], [], []>} : vector<128x128xbf16>, vector<128x128xbf16>, vector<128x128xf32> -> vector<128x128xf32>
      %c0_8 = arith.constant 0 : index
      %c0_9 = arith.constant 0 : index
      %17 = vector.load %arg7[%c0_8, %c0_9] : memref<1x128xf32, #tpu.memory_space<vmem>>, vector<1x128xf32>
      %18 = vector.broadcast %17 : vector<1x128xf32> to vector<128x128xf32>
      %19 = arith.addf %16, %18 : vector<128x128xf32>
      %c0_10 = arith.constant 0 : index
      %c0_11 = arith.constant 0 : index
      %20 = vector.load %arg8[%c0_10, %c0_11] : memref<128x128xf32, #tpu.memory_space<vmem>>, vector<128x128xf32>
      tpu.vector_store %arg8[%c0_10, %c0_11], %19 {strides = array<i32>} : memref<128x128xf32, #tpu.memory_space<vmem>>, vector<128x128xf32>,
    } else {
    }
    return
  }
  func.func @transform_0(%arg0: i32, %arg1: i32) -> (i32, i32) {
    %c0_i32 = arith.constant 0 : i32
    %c0_i32_0 = arith.constant 0 : i32
    %c0_i32_1 = arith.constant 0 : i32
    return %c0_i32, %c0_i32_0 : i32, i32
  }
  func.func @transform_1(%arg0: i32, %arg1: i32) -> (i32, i32) {
    %c0_i32 = arith.constant 0 : i32
    %c0_i32_0 = arith.constant 0 : i32
    %c0_i32_1 = arith.constant 0 : i32
    return %c0_i32, %c0_i32_0 : i32, i32
  }
  func.func @transform_2(%arg0: i32, %arg1: i32) -> (i32, i32) {
    %c0_i32 = arith.constant 0 : i32
    %c0_i32_0 = arith.constant 0 : i32
    %c0_i32_1 = arith.constant 0 : i32
    return %c0_i32, %c0_i32_0 : i32, i32
  }
  func.func @transform_3(%arg0: i32, %arg1: i32) -> (i32, i32) {
    %c0_i32 = arith.constant 0 : i32
    %c0_i32_0 = arith.constant 0 : i32
    %c0_i32_1 = arith.constant 0 : i32
    return %c0_i32, %c0_i32_0 : i32, i32
  }
  func.func @transform_4(%arg0: i32, %arg1: i32) -> (i32, i32) {
    %c0_i32 = arith.constant 0 : i32
    %c0_i32_0 = arith.constant 0 : i32
    %c0_i32_1 = arith.constant 0 : i32
    return %c0_i32, %c0_i32_0 : i32, i32
  }
  func.func @transform_5(%arg0: i32, %arg1: i32) -> (i32, i32) {
    %c0_i32 = arith.constant 0 : i32
    %c0_i32_0 = arith.constant 0 : i32
    %c0_i32_1 = arith.constant 0 : i32
    return %c0_i32, %c0_i32_0 : i32, i32
  }
  func.func @transform_6(%arg0: i32, %arg1: i32) -> (i32, i32) {
    %0 = arith.muli %arg1, %arg0 : i32
    %c0_i32 = arith.constant 0 : i32
    %c0_i32_0 = arith.constant 0 : i32
    return %0, %c0_i32 : i32, i32
  }
}

module attributes {stable_mosaic.version = 11 : i64} {
  func.func @kernel(%arg0: i32, %arg1: i32, %arg2: memref<128x128xbf16, #tpu.memory_space<vmem>>, %arg3: memref<128x128xbf16, #tpu.memory_space<vmem>>, %arg4: memref<128x128xbf16, #tpu.memory_space<vmem>>, %arg5: memref<1x128xf32, #tpu.memory_space<vmem>>, %arg6: memref<128x128xbf16, #tpu.memory_space<vmem>>, %arg7: memref<1x128xf32, #tpu.memory_space<vmem>>, %arg8: memref<128x128xf32, #tpu.memory_space<vmem>>, %arg9: memref<128x128xbf16, #tpu.memory_space<vmem>>) attributes {dimension_semantics = [#tpu.dimension_semantics<arbitrary>, #tpu.dimension_semantics<arbitrary>], iteration_bounds = array<i64: 2, 1>, scalar_prefetch = 0 : i64, scratch_operands = 1 : i64, tpu.core_type = #tpu.core_type<tc>, window_params = [{pipeline_mode = #tpu.pipeline_mode<synchronous>, transform_indices = @transform_0, window_bounds = array<i64: 128, 128>}, {pipeline_mode = #tpu.pipeline_mode<synchronous>, transform_indices = @transform_1, window_bounds = array<i64: 128, 128>}, {pipeline_mode = #tpu.pipeline_mode<synchronous>, transform_indices = @transform_2, window_bounds = array<i64: 128, 128>}, {pipeline_mode = #tpu.pipeline_mode<synchronous>, transform_indices = @transform_3, window_bounds = array<i64: 1, 128>}, {pipeline_mode = #tpu.pipeline_mode<synchronous>, transform_indices = @transform_4, window_bounds = array<i64: 128, 128>}, {pipeline_mode = #tpu.pipeline_mode<synchronous>, transform_indices = @transform_5, window_bounds = array<i64: 1, 128>}, {transform_indices = @transform_6, window_bounds = array<i64: 128, 128>}]} {
    %c128_i32 = arith.constant 128 : i32
    %0 = arith.muli %arg1, %c128_i32 : i32
    %1 = tpu.assume_multiple %0, 128 : i32
    %c0_i32 = arith.constant 0 : i32
    %2 = arith.cmpi eq, %arg0, %c0_i32 : i32
    %3 = arith.extui %2 : i1 to i32
    %c0_i32_0 = arith.constant 0 : i32
    %4 = arith.cmpi ne, %3, %c0_i32_0 : i32
    scf.if %4 {
      %8 = arith.index_cast %1 : i32 to index
      %c0 = arith.constant 0 : index
      %9 = vector.load %arg2[%8, %c0] : memref<128x128xbf16, #tpu.memory_space<vmem>>, vector<128x128xbf16>
      %c0_2 = arith.constant 0 : index
      %c0_3 = arith.constant 0 : index
      %10 = vector.load %arg3[%c0_2, %c0_3] : memref<128x128xbf16, #tpu.memory_space<vmem>>, vector<128x128xbf16>
      %cst = arith.constant dense<0.000000e+00> : vector<128x128xf32>
      %11 = tpu.matmul %9, %10, %cst {dimension_numbers = #tpu.dot_dimension_numbers<[1], [0], [0], [1], [0, 0, 1, 1], [], []>} : vector<128x128xbf16>, vector<128x128xbf16>, vector<128x128xf32> -> vector<128x128xf32>
      %cst_4 = arith.constant 0.000000e+00 : f32
      %12 = vector.broadcast %cst_4 : f32 to vector<128x128xf32>
      %13 = arith.maximumf %11, %12 : vector<128x128xf32>
      %14 = arith.truncf %13 : vector<128x128xf32> to vector<128x128xbf16>
      %c0_5 = arith.constant 0 : index
      %c0_6 = arith.constant 0 : index
      %15 = vector.load %arg4[%c0_5, %c0_6] : memref<128x128xbf16, #tpu.memory_space<vmem>>, vector<128x128xbf16>
      %cst_7 = arith.constant dense<0.000000e+00> : vector<128x128xf32>
      %16 = tpu.matmul %14, %15, %cst_7 {dimension_numbers = #tpu.dot_dimension_numbers<[1], [0], [0], [1], [0, 0, 1, 1], [], []>} : vector<128x128xbf16>, vector<128x128xbf16>, vector<128x128xf32> -> vector<128x128xf32>
      %c0_8 = arith.constant 0 : index
      %c0_9 = arith.constant 0 : index
      %17 = vector.load %arg5[%c0_8, %c0_9] : memref<1x128xf32, #tpu.memory_space<vmem>>, vector<1x128xf32>
      %18 = vector.broadcast %17 : vector<1x128xf32> to vector<128x128xf32>
      %19 = arith.addf %16, %18 : vector<128x128xf32>
      %20 = arith.truncf %19 : vector<128x128xf32> to vector<128x128xbf16>
      %21 = arith.index_cast %1 : i32 to index
      %c0_10 = arith.constant 0 : index
      %22 = vector.load %arg9[%21, %c0_10] : memref<128x128xbf16, #tpu.memory_space<vmem>>, vector<128x128xbf16>
      tpu.vector_store %arg9[%21, %c0_10], %20 {strides = array<i32>} : memref<128x128xbf16, #tpu.memory_space<vmem>>, vector<128x128xbf16>,
    } else {
    }
    %c1_i32 = arith.constant 1 : i32
    %5 = arith.cmpi eq, %arg0, %c1_i32 : i32
    %6 = arith.extui %5 : i1 to i32
    %c0_i32_1 = arith.constant 0 : i32
    %7 = arith.cmpi ne, %6, %c0_i32_1 : i32
    scf.if %7 {
      %8 = arith.index_cast %1 : i32 to index
      %c0 = arith.constant 0 : index
      %9 = vector.load %arg2[%8, %c0] : memref<128x128xbf16, #tpu.memory_space<vmem>>, vector<128x128xbf16>
      %c0_2 = arith.constant 0 : index
      %c0_3 = arith.constant 0 : index
      %10 = vector.load %arg9[%c0_2, %c0_3] : memref<128x128xbf16, #tpu.memory_space<vmem>>, vector<128x128xbf16>
      %cst = arith.constant dense<0.000000e+00> : vector<128x128xf32>
      %11 = tpu.matmul %9, %10, %cst {dimension_numbers = #tpu.dot_dimension_numbers<[1], [0], [0], [1], [0, 0, 1, 1], [], []>} : vector<128x128xbf16>, vector<128x128xbf16>, vector<128x128xf32> -> vector<128x128xf32>
      %cst_4 = arith.constant 0.000000e+00 : f32
      %12 = vector.broadcast %cst_4 : f32 to vector<128x128xf32>
      %13 = arith.maximumf %11, %12 : vector<128x128xf32>
      %14 = arith.truncf %13 : vector<128x128xf32> to vector<128x128xbf16>
      %c0_5 = arith.constant 0 : index
      %c0_6 = arith.constant 0 : index
      %15 = vector.load %arg6[%c0_5, %c0_6] : memref<128x128xbf16, #tpu.memory_space<vmem>>, vector<128x128xbf16>
      %cst_7 = arith.constant dense<0.000000e+00> : vector<128x128xf32>
      %16 = tpu.matmul %14, %15, %cst_7 {dimension_numbers = #tpu.dot_dimension_numbers<[1], [0], [0], [1], [0, 0, 1, 1], [], []>} : vector<128x128xbf16>, vector<128x128xbf16>, vector<128x128xf32> -> vector<128x128xf32>
      %c0_8 = arith.constant 0 : index
      %c0_9 = arith.constant 0 : index
      %17 = vector.load %arg7[%c0_8, %c0_9] : memref<1x128xf32, #tpu.memory_space<vmem>>, vector<1x128xf32>
      %18 = vector.broadcast %17 : vector<1x128xf32> to vector<128x128xf32>
      %19 = arith.addf %16, %18 : vector<128x128xf32>
      %c0_10 = arith.constant 0 : index
      %c0_11 = arith.constant 0 : index
      %20 = vector.load %arg8[%c0_10, %c0_11] : memref<128x128xf32, #tpu.memory_space<vmem>>, vector<128x128xf32>
      tpu.vector_store %arg8[%c0_10, %c0_11], %19 {strides = array<i32>} : memref<128x128xf32, #tpu.memory_space<vmem>>, vector<128x128xf32>,
    } else {
    }
    return
  }
  func.func @transform_0(%arg0: i32, %arg1: i32) -> (i32, i32) {
    %c0_i32 = arith.constant 0 : i32
    %c0_i32_0 = arith.constant 0 : i32
    %c0_i32_1 = arith.constant 0 : i32
    return %c0_i32, %c0_i32_0 : i32, i32
  }
  func.func @transform_1(%arg0: i32, %arg1: i32) -> (i32, i32) {
    %c0_i32 = arith.constant 0 : i32
    %c0_i32_0 = arith.constant 0 : i32
    %c0_i32_1 = arith.constant 0 : i32
    return %c0_i32, %c0_i32_0 : i32, i32
  }
  func.func @transform_2(%arg0: i32, %arg1: i32) -> (i32, i32) {
    %c0_i32 = arith.constant 0 : i32
    %c0_i32_0 = arith.constant 0 : i32
    %c0_i32_1 = arith.constant 0 : i32
    return %c0_i32, %c0_i32_0 : i32, i32
  }
  func.func @transform_3(%arg0: i32, %arg1: i32) -> (i32, i32) {
    %c0_i32 = arith.constant 0 : i32
    %c0_i32_0 = arith.constant 0 : i32
    %c0_i32_1 = arith.constant 0 : i32
    return %c0_i32, %c0_i32_0 : i32, i32
  }
  func.func @transform_4(%arg0: i32, %arg1: i32) -> (i32, i32) {
    %c0_i32 = arith.constant 0 : i32
    %c0_i32_0 = arith.constant 0 : i32
    %c0_i32_1 = arith.constant 0 : i32
    return %c0_i32, %c0_i32_0 : i32, i32
  }
  func.func @transform_5(%arg0: i32, %arg1: i32) -> (i32, i32) {
    %c0_i32 = arith.constant 0 : i32
    %c0_i32_0 = arith.constant 0 : i32
    %c0_i32_1 = arith.constant 0 : i32
    return %c0_i32, %c0_i32_0 : i32, i32
  }
  func.func @transform_6(%arg0: i32, %arg1: i32) -> (i32, i32) {
    %0 = arith.muli %arg1, %arg0 : i32
    %c0_i32 = arith.constant 0 : i32
    %c0_i32_0 = arith.constant 0 : i32
    return %0, %c0_i32 : i32, i32
  }
}

</mosaic_0001>

<bundles_post_ra>
// kernel: tpu_custom_call.1
= control target key start
LH: loop header
LB: loop body
LE: loop exit
PB: predicated region body
PF: predicated region fallthrough
CT: control target
= control target key end

     0   :  { %11 = vsyncpa [#allocation4], 0  ;;  %s2046_s0 = inlined_call_operand.hbm [shape: bf16[128,128], index: 0, kind: input, shape index: {}]   ;;  %s2047_s1 = inlined_call_operand.hbm [shape: bf16[128,128], index: 1, kind: input, shape index: {}]   ;;  %s2048_s2 = inlined_call_operand.hbm [shape: bf16[128,128], index: 2, kind: input, shape index: {}]   ;;  %s2049_s3 = inlined_call_operand.vmem [shape: f32[1,128], index: 3, kind: input, shape index: {}]   ;;  %s2050_s4 = inlined_call_operand.hbm [shape: bf16[128,128], index: 4, kind: input, shape index: {}]   ;;  %s2051_s5 = inlined_call_operand.vmem [shape: f32[1,128], index: 5, kind: input, shape index: {}]   ;;  %s2052_s6 = inlined_call_operand.hbm [shape: f32[128,128], index: 6, kind: output, shape index: {}]  }
   0x1   :  { %12 = vsyncpa [#allocation7], 0 }
   0x2   :  { %13 = vsyncpa [#allocation10], 0 }
   0x3   :  { %14 = vsyncpa [#allocation5], 0 }
   0x4   :  { %16 = vsyncpa [#allocation5 + $0x1], 0  ;;  %s1852_s21 = smov 0   ;;  %s1854_s22 = smov 0  }
   0x5   :  { %s1856_s23 = smov 0  }
   0x6 LB: > { %s1257_s24 = sadd.s32 4294967295, %s1806_s23   ;;  %p1259_p0 = scmp.ge.s32.totalorder %s1806_s23, 1  ;;  %s1806_s23 = sphi %s1856_s23, %s22_s23   ;;  %s1802_s22 = sphi %s1854_s22, %s2067_s22   ;;  %s1798_s21 = sphi %s1852_s21, %s2066_s21  }
   0x7   : > { %p193_p1 = scmp.lt.s32.totalorder %s1806_s23, 3  ;;  %p1873_p2 = scmp.eq.s32.totalorder %s1257_s24, 0 }
   0x8   : > { %s1808_s28 = smov [#allocation6]   ;;  %s34_s7 = sadd.s32 1, %s1802_s22 }
   0x9   : > { %s2056_s26 = scalar_select %p1873_p2, 1, 0 }
   0xa   : > { %p1877_p3 = pnand %p1259_p0, %p193_p1  ;;  %s218_s29 = sshll.u32 %s1808_s28, 4  ;;  %s219_s29 = int_to_ptr.vmem [resolvable:$true] %s218_s29 }
   0xb   : > { %p1890_p6 = scmp.ge.s32.totalorder %s34_s7, 2  ;;  %s1630_s11 = scalar_lea.hbm %s2047_s1, 1024 }
   0xc   : > { %s2057_s27 = scalar_select %p1877_p3, 1, 0 }
   0xd   : > { %p1529_p4 = pneg %p1877_p3  ;;  %p1631_p7 = scmp.ne.s32.totalorder %s2047_s1, %s1630_s11 }
   0xe   : > { %s2059_s8 = scalar_select %p1890_p6, 1, 0 }
   0xf   : > { %p1885_p5 = pnand %p1873_p2, %p1529_p4  ;;  %p1637_p11 = scmp.lt.u32.totalorder %s1630_s11, %s2047_s1 }
  0x11   : > { %p1902_p8 = pneg %p1885_p5 }
  0x13   : > { %p1633_p9 = pnand %p1902_p8, %p1631_p7 }
  0x15   : > { %p1634_p10 = pneg %p1633_p9 }
  0x17   : > { %p1639_p12 = pnand %p1637_p11, %p1634_p10 }
  0x19   : > { %1642 = shalt.err (!%p1639_p12)
}
  0x1a   : > { %s1643_s17 = scalar_lea.vmem %s219_s29, 1024  ;;  %p1651_p4 = scmp.lt.s32.totalorder %s219_s29, %s219_s29 }
  0x1b   : > { %p1644_p13 = scmp.ne.s32.totalorder %s219_s29, %s1643_s17  ;;  %p1652_p2 = scmp.lt.s32.totalorder %s1643_s17, %s1643_s17 }
  0x1d   : > { %p1646_p0 = pnand %p1644_p13, %p1902_p8  ;;  %p1653_p3 = por %p1652_p2, %p1651_p4 }
  0x1f   : > { %p1647_p1 = pneg %p1646_p0 }
  0x21   : > { %p1654_p6 = pnand %p1653_p3, %p1647_p1 }
  0x23   : > { %1657 = shalt.err (!%p1654_p6)
}
  0x24   : > { %s1809_s18 = smov 64   ;;  %s1810_s19 = smov 4  }
  0x25   : > { %1535 = dma.hbm_to_vmem [thread:$0]  (!%p1885_p5), %s2047_s1, 1024, %s219_s29, [#allocation7], %s1809_s18, %s1809_s18, %s1810_s19  }
  0x26   : > { %p2061_p7 = scmp.ne.s32.totalorder %s2059_s8, 0  ;;  %s1811_s9 = smov [#allocation3]  }
  0x27   : > { %s205_s10 = sshll.u32 %s1811_s9, 4  ;;  %s1812_s11 = smov [#allocation8]   ;;  %s206_s10 = int_to_ptr.vmem [resolvable:$true] %s205_s10 }
  0x28   : > { %s2069_s7 = smov (%p2061_p7, %s34_s7), 0  ;;  %s231_s12 = sshll.u32 %s1812_s11, 4  ;;  %s232_s12 = int_to_ptr.vmem [resolvable:$true] %s231_s12 }
  0x29   : > { %s1658_s16 = scalar_lea.hbm %s2046_s0, 1024 }
  0x2a   : > { %p1659_p2 = scmp.ne.s32.totalorder %s2046_s0, %s1658_s16  ;;  %p1665_p9 = scmp.lt.u32.totalorder %s1658_s16, %s2046_s0 }
  0x2c   : > { %p1661_p3 = pnand %p1659_p2, %p1902_p8 }
  0x2e   : > { %p1662_p6 = pneg %p1661_p3 }
  0x30   : > { %p1667_p10 = pnand %p1665_p9, %p1662_p6 }
  0x32   : > { %1670 = shalt.err (!%p1667_p10)
}
  0x33   : > { %s1671_s20 = scalar_lea.vmem %s206_s10, 1024  ;;  %p1679_p0 = scmp.lt.s32.totalorder %s206_s10, %s206_s10 }
  0x34   : > { %p1672_p11 = scmp.ne.s32.totalorder %s206_s10, %s1671_s20  ;;  %p1680_p1 = scmp.lt.s32.totalorder %s1671_s20, %s1671_s20 }
  0x36   : > { %p1674_p12 = pnand %p1672_p11, %p1902_p8  ;;  %p1681_p4 = por %p1680_p1, %p1679_p0 }
  0x38   : > { %p1675_p13 = pneg %p1674_p12 }
  0x3a   : > { %p1682_p7 = pnand %p1681_p4, %p1675_p13 }
  0x3c   : > { %1685 = shalt.err (!%p1682_p7)
}
  0x3d   : > { %1532 = dma.hbm_to_vmem [thread:$0]  (!%p1885_p5), %s2046_s0, 1024, %s206_s10, [#allocation4], %s1809_s18, %s1809_s18, %s1810_s19  }
  0x3e   : > { %s1686_s13 = scalar_lea.hbm %s2048_s2, 1024 }
  0x3f   : > { %p1687_p2 = scmp.ne.s32.totalorder %s2048_s2, %s1686_s13  ;;  %p1693_p9 = scmp.lt.u32.totalorder %s1686_s13, %s2048_s2 }
  0x41   : > { %p1689_p3 = pnand %p1687_p2, %p1902_p8 }
  0x43   : > { %p1690_p6 = pneg %p1689_p3 }
  0x45   : > { %p1695_p10 = pnand %p1693_p9, %p1690_p6 }
  0x47   : > { %1698 = shalt.err (!%p1695_p10)
}
  0x48   : > { %s1699_s8 = scalar_lea.vmem %s232_s12, 1024  ;;  %p1707_p0 = scmp.lt.s32.totalorder %s232_s12, %s232_s12 }
  0x49   : > { %p1700_p11 = scmp.ne.s32.totalorder %s232_s12, %s1699_s8  ;;  %p1708_p1 = scmp.lt.s32.totalorder %s1699_s8, %s1699_s8 }
  0x4b   : > { %p1702_p12 = pnand %p1700_p11, %p1902_p8  ;;  %p1709_p4 = por %p1708_p1, %p1707_p0 }
  0x4d   : > { %p1703_p13 = pneg %p1702_p12 }
  0x4f   : > { %p1710_p7 = pnand %p1709_p4, %p1703_p13 }
  0x51   : > { %1713 = shalt.err (!%p1710_p7)
}
  0x52   : > { %1538 = dma.hbm_to_vmem [thread:$0]  (!%p1885_p5), %s2048_s2, 1024, %s232_s12, [#allocation7], %s1809_s18, %s1809_s18, %s1810_s19  }
  0x53   : > { %s1813_s25 = smov [#allocation9]   ;;  %s1714_s13 = scalar_lea.hbm %s2050_s4, 1024 }
  0x54   : > { %s247_s28 = sshll.u32 %s1813_s25, 4  ;;  %p1715_p2 = scmp.ne.s32.totalorder %s2050_s4, %s1714_s13  ;;  %s248_s28 = int_to_ptr.vmem [resolvable:$true] %s247_s28 }
  0x55   : > { %p1721_p9 = scmp.lt.u32.totalorder %s1714_s13, %s2050_s4 }
  0x56   : > { %p1717_p3 = pnand %p1715_p2, %p1902_p8 }
  0x58   : > { %p1718_p6 = pneg %p1717_p3 }
  0x5a   : > { %p1723_p10 = pnand %p1721_p9, %p1718_p6 }
  0x5c   : > { %1726 = shalt.err (!%p1723_p10)
}
  0x5d   : > { %s1727_s12 = scalar_lea.vmem %s248_s28, 1024  ;;  %p1735_p0 = scmp.lt.s32.totalorder %s248_s28, %s248_s28 }
  0x5e   : > { %p1728_p11 = scmp.ne.s32.totalorder %s248_s28, %s1727_s12  ;;  %p1736_p1 = scmp.lt.s32.totalorder %s1727_s12, %s1727_s12 }
  0x60   : > { %p1730_p12 = pnand %p1728_p11, %p1902_p8  ;;  %p1737_p4 = por %p1736_p1, %p1735_p0 }
  0x62   : > { %p1731_p13 = pneg %p1730_p12 }
  0x64   : > { %p1738_p7 = pnand %p1737_p4, %p1731_p13 }
  0x66   : > { %1741 = shalt.err (!%p1738_p7)
}
  0x67   : > { %1541 = dma.hbm_to_vmem [thread:$0]  (!%p1885_p5), %s2050_s4, 1024, %s248_s28, [#allocation10], %s1809_s18, %s1809_s18, %s1810_s19  }
  0x68   : > { %p2062_p2 = scmp.ne.s32.totalorder %s2057_s27, 0 }
  0x69   : > { %p2063_p8 = scmp.ne.s32.totalorder (!%p2062_p2), %s2056_s26, 0 }
  0x6a   : > { %266 = sbr.rel (%p2062_p2) target bundleno = 1136 (0x470), region = 44 }
  0x71   : > { %1781 = dma.done.wait (%p2063_p8), [#allocation4], 1024  }
  0x72   : > { %1783 = vsyncadd (%p2063_p8), [#allocation4], 4294966272 }
  0x73   : > { %1785 = dma.done.wait (%p2063_p8), [#allocation7], 2048  }
  0x74   : > { %1787 = vsyncadd (%p2063_p8), [#allocation7], 4294965248 }
  0x75   : > { %1789 = dma.done.wait (%p2063_p8), [#allocation10], 1024  }
  0x76   : > { %1791 = vsyncadd (%p2063_p8), [#allocation10], 4294966272  ;;  %p1269_p5 = scmp.ne.s32.totalorder %s1798_s21, 0 }
  0x77   : > { %v1590_v0 = vld [vmem:[#allocation6] sm:$0xff] (!%p1269_p5)   ;;  %v1591_v1 = vld [vmem:[#allocation6 + $0x8] sm:$0xff] (!%p1269_p5)   ;;  %v1592_v2 = vld [vmem:[#allocation6 + $0x10] sm:$0xff] (!%p1269_p5)  }
  0x78   : > { %310 = sbr.rel (%p1269_p5) target bundleno = 616 (0x268), region = 64  ;;  %1381 = vmatprep.subr.bf16.mxu0 (!%p1269_p5), %v1590_v0  ;;  %v1593_v3 = vld [vmem:[#allocation6 + $0x18] sm:$0xff] (!%p1269_p5)   ;;  %v1598_v4 = vld [vmem:[#allocation3] sm:$0xff] (!%p1269_p5)   ;;  %v1595_v6 = vld [vmem:[#allocation6 + $0x28] sm:$0xff] (!%p1269_p5)  }
  0x79   : > { %1382 = vmatpush3.bf16.msra.mxu0 (!%p1269_p5), %v1590_v0  ;;  %1397 = vmatprep.mubr.bf16.mxu0 (!%p1269_p5), %v1598_v4  ;;  %v1594_v5 = vld [vmem:[#allocation6 + $0x20] sm:$0xff] (!%p1269_p5)   ;;  %v1607_v8 = vld [vmem:[#allocation8 + $0x8] sm:$0xff] (!%p1269_p5)   ;;  %v1596_v9 = vld [vmem:[#allocation6 + $0x30] sm:$0xff] (!%p1269_p5)  }
  0x7a   : > { %1383 = vmatprep.subr.bf16.mxu0 (!%p1269_p5), %v1591_v1  ;;  %v1606_v7 = vld [vmem:[#allocation8] sm:$0xff] (!%p1269_p5)   ;;  %v1608_v10 = vld [vmem:[#allocation8 + $0x10] sm:$0xff] (!%p1269_p5)   ;;  %v1597_v11 = vld [vmem:[#allocation6 + $0x38] sm:$0xff] (!%p1269_p5)  }
  0x7b   : > { %1413 = vmatprep.subr.bf16.mxu1 (!%p1269_p5), %v1606_v7  ;;  %v1609_v12 = vld [vmem:[#allocation8 + $0x18] sm:$0xff] (!%p1269_p5)   ;;  %v1610_v13 = vld [vmem:[#allocation8 + $0x20] sm:$0xff] (!%p1269_p5)   ;;  %v1599_v14 = vld [vmem:[#allocation3 + $0x8] sm:$0xff] (!%p1269_p5)  }
  0x7c   : > { %1414 = vmatpush3.bf16.msra.mxu1 (!%p1269_p5), %v1606_v7  ;;  %v1600_v15 = vld [vmem:[#allocation3 + $0x10] sm:$0xff] (!%p1269_p5)   ;;  %v1611_v16 = vld [vmem:[#allocation8 + $0x28] sm:$0xff] (!%p1269_p5)   ;;  %v1601_v17 = vld [vmem:[#allocation3 + $0x18] sm:$0xff] (!%p1269_p5)  }
  0x7d   : > { %1384 = vmatpush3.bf16.msra.mxu0 (!%p1269_p5), %v1591_v1  ;;  %1415 = vmatprep.subr.bf16.mxu1 (!%p1269_p5), %v1607_v8  ;;  %v1602_v18 = vld [vmem:[#allocation3 + $0x20] sm:$0xff] (!%p1269_p5)   ;;  %v1603_v19 = vld [vmem:[#allocation3 + $0x28] sm:$0xff] (!%p1269_p5)   ;;  %v1604_v20 = vld [vmem:[#allocation3 + $0x30] sm:$0xff] (!%p1269_p5)  }
  0x7e   : > { %1385 = vmatprep.subr.bf16.mxu0 (!%p1269_p5), %v1592_v2  ;;  %v1605_v21 = vld [vmem:[#allocation3 + $0x38] sm:$0xff] (!%p1269_p5)   ;;  %v1612_v22 = vld [vmem:[#allocation8 + $0x30] sm:$0xff] (!%p1269_p5)   ;;  %v1286_v1 = vld [vmem:[%s2049_s3] ss:$0 sm:$0xff] (!%p1269_p5) }
  0x7f   : > { %v1613_v23 = vld [vmem:[#allocation8 + $0x38] sm:$0xff]  }
  0x80   : > { %1416 = vmatpush3.bf16.msra.mxu1 %v1607_v8 }
  0x81   : > { %1386 = vmatpush3.bf16.msra.mxu0 %v1592_v2  ;;  %1417 = vmatprep.subr.bf16.mxu1 %v1608_v10 }
  0x82   : > { %1387 = vmatprep.subr.bf16.mxu0 %v1593_v3 }
  0x84   : > { %1418 = vmatpush3.bf16.msra.mxu1 %v1608_v10 }
  0x85   : > { %1388 = vmatpush3.bf16.msra.mxu0 %v1593_v3  ;;  %1419 = vmatprep.subr.bf16.mxu1 %v1609_v12 }
  0x86   : > { %1389 = vmatprep.subr.bf16.mxu0 %v1594_v5 }
  0x88   : > { %1420 = vmatpush3.bf16.msra.mxu1 %v1609_v12 }
  0x89   : > { %1390 = vmatpush3.bf16.msra.mxu0 %v1594_v5  ;;  %1421 = vmatprep.subr.bf16.mxu1 %v1610_v13 }
  0x8a   : > { %1391 = vmatprep.subr.bf16.mxu0 %v1595_v6 }
  0x8c   : > { %1422 = vmatpush3.bf16.msra.mxu1 %v1610_v13 }
  0x8d   : > { %1392 = vmatpush3.bf16.msra.mxu0 %v1595_v6  ;;  %1423 = vmatprep.subr.bf16.mxu1 %v1611_v16 }
  0x8e   : > { %1393 = vmatprep.subr.bf16.mxu0 %v1596_v9 }
  0x90   : > { %1424 = vmatpush3.bf16.msra.mxu1 %v1611_v16 }
  0x91   : > { %1394 = vmatpush3.bf16.msra.mxu0 %v1596_v9  ;;  %1425 = vmatprep.subr.bf16.mxu1 %v1612_v22 }
  0x92   : > { %1395 = vmatprep.subr.bf16.mxu0 %v1597_v11 }
  0x94   : > { %1426 = vmatpush3.bf16.msra.mxu1 %v1612_v22 }
  0x95   : > { %1396 = vmatpush3.bf16.msra.mxu0 %v1597_v11  ;;  %1427 = vmatprep.subr.bf16.mxu1 %v1613_v23 }
  0x98   : > { %1398 = vmatmul.mubr.bf16.vlgmr.msra.gmra.mrb[0].mxu0 %v1599_v14  ;;  %1428 = vmatpush3.bf16.msra.mxu1 %v1613_v23 }
  0x99   : > { %1401 = vmatprep.mubr.bf16.mxu0 %v1600_v15 }
  0xa0   : > { %1402 = vmatmul.mubr.bf16.gmra.mrb[4].mxu0 %v1601_v17 }
  0xa1   : > { %1405 = vmatprep.mubr.bf16.mxu0 %v1602_v18 }
  0xa8   : > { %1406 = vmatmul.mubr.bf16.gmra.mrb[8].mxu0 %v1603_v19 }
  0xa9   : > { %1409 = vmatprep.mubr.bf16.mxu0 %v1604_v20 }
  0xb0   : > { %1410 = vmatmul.mubr.bf16.gmra.mrb[12].mxu0 %v1605_v21 }
 0x16b   : > { %v1399_v24 = vpop.f32.mrb[0].mxu0 }
 0x16c   : > { %v477_v25 = vpop.f32.mrb[1].mxu0  ;;  %v542_v27 = vmax.f32 %v1399_v24, 0.0 }
 0x16d   : > { %v1400_v26 = vpop.f32.mrb[2].mxu0  ;;  %v540_v30 = vmax.f32 %v477_v25, 0.0 }
 0x16e   : > { %v543_v28 = vmax.f32 %v1400_v26, 0.0  ;;  %v480_v29 = vpop.f32.mrb[3].mxu0 }
 0x16f   : > { %v541_v31 = vmax.f32 %v480_v29, 0.0 }
 0x170   : > { %v557_v32 = vpack.c.bf16 %v543_v28, %v542_v27 }
 0x171   : > { %v556_v33 = vpack.c.bf16 %v541_v31, %v540_v30 }
 0x173   : > { %v1403_v34 = vpop.f32.mrb[4].mxu0  ;;  %1429 = vmatprep.mubr.bf16.mxu1 %v556_v33 }
 0x174   : > { %v493_v35 = vpop.f32.mrb[5].mxu0  ;;  %1430 = vmatmul.mubr.bf16.vlgmr.msra.gmra.mrb[0].mxu1 %v557_v32  ;;  %v546_v37 = vmax.f32 %v1403_v34, 0.0 }
 0x175   : > { %v1404_v36 = vpop.f32.mrb[6].mxu0  ;;  %v544_v40 = vmax.f32 %v493_v35, 0.0 }
 0x176   : > { %v547_v38 = vmax.f32 %v1404_v36, 0.0  ;;  %v496_v39 = vpop.f32.mrb[7].mxu0 }
 0x177   : > { %v545_v41 = vmax.f32 %v496_v39, 0.0 }
 0x178   : > { %v559_v42 = vpack.c.bf16 %v547_v38, %v546_v37 }
 0x179   : > { %v558_v43 = vpack.c.bf16 %v545_v41, %v544_v40 }
 0x17b   : > { %v1407_v44 = vpop.f32.mrb[8].mxu0  ;;  %1433 = vmatprep.mubr.bf16.mxu1 %v558_v43 }
 0x17c   : > { %v509_v45 = vpop.f32.mrb[9].mxu0  ;;  %1434 = vmatmul.mubr.bf16.gmra.mrb[4].mxu1 %v559_v42  ;;  %v550_v47 = vmax.f32 %v1407_v44, 0.0 }
 0x17d   : > { %v1408_v46 = vpop.f32.mrb[10].mxu0  ;;  %v548_v50 = vmax.f32 %v509_v45, 0.0 }
 0x17e   : > { %v551_v48 = vmax.f32 %v1408_v46, 0.0  ;;  %v512_v49 = vpop.f32.mrb[11].mxu0 }
 0x17f   : > { %v549_v51 = vmax.f32 %v512_v49, 0.0 }
 0x180   : > { %v561_v52 = vpack.c.bf16 %v551_v48, %v550_v47 }
 0x181   : > { %v560_v53 = vpack.c.bf16 %v549_v51, %v548_v50 }
 0x183   : > { %v1411_v54 = vpop.f32.mrb[12].mxu0  ;;  %1437 = vmatprep.mubr.bf16.mxu1 %v560_v53 }
 0x184   : > { %v525_v55 = vpop.f32.mrb[13].mxu0  ;;  %1438 = vmatmul.mubr.bf16.gmra.mrb[8].mxu1 %v561_v52  ;;  %v554_v57 = vmax.f32 %v1411_v54, 0.0 }
 0x185   : > { %v1412_v56 = vpop.f32.mrb[14].mxu0  ;;  %v552_v60 = vmax.f32 %v525_v55, 0.0 }
 0x186   : > { %v555_v58 = vmax.f32 %v1412_v56, 0.0  ;;  %v528_v59 = vpop.f32.mrb[15].mxu0 }
 0x187   : > { %v553_v61 = vmax.f32 %v528_v59, 0.0 }
 0x188   : > { %v563_v62 = vpack.c.bf16 %v555_v58, %v554_v57 }
 0x189   : > { %v562_v63 = vpack.c.bf16 %v553_v61, %v552_v60 }
 0x18b   : > { %1441 = vmatprep.mubr.bf16.mxu1 %v562_v63 }
 0x18c   : > { %1442 = vmatmul.mubr.bf16.gmra.mrb[12].mxu1 %v563_v62 }
 0x247   : > { %v1431_v0 = vpop.f32.mrb[0].mxu1 }
 0x248   : > { %v669_v2 = vpop.f32.mrb[1].mxu1  ;;  %v678_v4 = vadd.f32 %v1431_v0, %v1286_v1 }
 0x249   : > { %v1432_v3 = vpop.f32.mrb[2].mxu1  ;;  %v670_v7 = vadd.f32 %v1286_v1, %v669_v2 }
 0x24a   : > { %v681_v5 = vadd.f32 %v1432_v3, %v1286_v1  ;;  %v672_v6 = vpop.f32.mrb[3].mxu1 }
 0x24b   : > { %v673_v8 = vadd.f32 %v1286_v1, %v672_v6 }
 0x24c   : > { %v733_v9 = vpack.c.bf16 %v681_v5, %v678_v4 }
 0x24d   : > { %v732_v10 = vpack.c.bf16 %v673_v8, %v670_v7 }
 0x24e   : > { %745 = vst [vmem:[#allocation2 + $0x8] sm:$0xff] %v733_v9 }
 0x24f   : > { %744 = vst [vmem:[#allocation2] sm:$0xff] %v732_v10  ;;  %v1435_v11 = vpop.f32.mrb[4].mxu1 }
 0x250   : > { %v685_v12 = vpop.f32.mrb[5].mxu1  ;;  %v694_v14 = vadd.f32 %v1435_v11, %v1286_v1 }
 0x251   : > { %v1436_v13 = vpop.f32.mrb[6].mxu1  ;;  %v686_v17 = vadd.f32 %v1286_v1, %v685_v12 }
 0x252   : > { %v697_v15 = vadd.f32 %v1436_v13, %v1286_v1  ;;  %v688_v16 = vpop.f32.mrb[7].mxu1 }
 0x253   : > { %v689_v18 = vadd.f32 %v1286_v1, %v688_v16 }
 0x254   : > { %v735_v19 = vpack.c.bf16 %v697_v15, %v694_v14 }
 0x255   : > { %v734_v20 = vpack.c.bf16 %v689_v18, %v686_v17 }
 0x256   : > { %747 = vst [vmem:[#allocation2 + $0x18] sm:$0xff] %v735_v19 }
 0x257   : > { %746 = vst [vmem:[#allocation2 + $0x10] sm:$0xff] %v734_v20  ;;  %v1439_v21 = vpop.f32.mrb[8].mxu1 }
 0x258   : > { %v701_v22 = vpop.f32.mrb[9].mxu1  ;;  %v710_v24 = vadd.f32 %v1439_v21, %v1286_v1 }
 0x259   : > { %v1440_v23 = vpop.f32.mrb[10].mxu1  ;;  %v702_v27 = vadd.f32 %v1286_v1, %v701_v22 }
 0x25a   : > { %v713_v25 = vadd.f32 %v1440_v23, %v1286_v1  ;;  %v704_v26 = vpop.f32.mrb[11].mxu1 }
 0x25b   : > { %v705_v28 = vadd.f32 %v1286_v1, %v704_v26 }
 0x25c   : > { %v737_v29 = vpack.c.bf16 %v713_v25, %v710_v24 }
 0x25d   : > { %v736_v30 = vpack.c.bf16 %v705_v28, %v702_v27 }
 0x25e   : > { %749 = vst [vmem:[#allocation2 + $0x28] sm:$0xff] %v737_v29 }
 0x25f   : > { %748 = vst [vmem:[#allocation2 + $0x20] sm:$0xff] %v736_v30  ;;  %v1443_v31 = vpop.f32.mrb[12].mxu1 }
 0x260   : > { %v717_v32 = vpop.f32.mrb[13].mxu1  ;;  %v726_v34 = vadd.f32 %v1443_v31, %v1286_v1 }
 0x261   : > { %v1444_v33 = vpop.f32.mrb[14].mxu1  ;;  %v718_v37 = vadd.f32 %v1286_v1, %v717_v32 }
 0x262   : > { %v729_v35 = vadd.f32 %v1444_v33, %v1286_v1  ;;  %v720_v36 = vpop.f32.mrb[15].mxu1 }
 0x263   : > { %v721_v38 = vadd.f32 %v1286_v1, %v720_v36 }
 0x264   : > { %v739_v39 = vpack.c.bf16 %v729_v35, %v726_v34 }
 0x265   : > { %v738_v40 = vpack.c.bf16 %v721_v38, %v718_v37 }
 0x266   : > { %751 = vst [vmem:[#allocation2 + $0x38] sm:$0xff] %v739_v39 }
 0x267   : > { %750 = vst [vmem:[#allocation2 + $0x30] sm:$0xff] %v738_v40 }
 0x268 PF: > { %p1295_p3 = scmp.ne.s32.totalorder %s1798_s21, 1 }
 0x269   : > { %v776_v41 = vld [vmem:[#allocation2] sm:$0xff] (!%p1295_p3)  ;;  %v777_v42 = vld [vmem:[#allocation2 + $0x8] sm:$0xff] (!%p1295_p3)  ;;  %v778_v44 = vld [vmem:[#allocation2 + $0x10] sm:$0xff] (!%p1295_p3) }
 0x26a   : > { %755 = sbr.rel (%p1295_p3) target bundleno = 1112 (0x458), region = 68  ;;  %1445 = vmatprep.subr.bf16.mxu0 (!%p1295_p3), %v776_v41  ;;  %v1614_v43 = vld [vmem:[#allocation3] sm:$0xff] (!%p1295_p3)   ;;  %v779_v45 = vld [vmem:[#allocation2 + $0x18] sm:$0xff] (!%p1295_p3)  ;;  %v1623_v48 = vld [vmem:[#allocation9 + $0x8] sm:$0xff] (!%p1295_p3)  }
 0x26b   : > { %1446 = vmatpush3.bf16.msra.mxu0 (!%p1295_p3), %v776_v41  ;;  %1461 = vmatprep.mubr.bf16.mxu0 (!%p1295_p3), %v1614_v43  ;;  %v780_v46 = vld [vmem:[#allocation2 + $0x20] sm:$0xff] (!%p1295_p3)  ;;  %v1624_v49 = vld [vmem:[#allocation9 + $0x10] sm:$0xff] (!%p1295_p3)   ;;  %v781_v50 = vld [vmem:[#allocation2 + $0x28] sm:$0xff] (!%p1295_p3) }
 0x26c   : > { %1447 = vmatprep.subr.bf16.mxu0 (!%p1295_p3), %v777_v42  ;;  %v1622_v47 = vld [vmem:[#allocation9] sm:$0xff] (!%p1295_p3)   ;;  %v1625_v51 = vld [vmem:[#allocation9 + $0x18] sm:$0xff] (!%p1295_p3)   ;;  %v1627_v55 = vld [vmem:[#allocation9 + $0x28] sm:$0xff] (!%p1295_p3)  }
 0x26d   : > { %1477 = vmatprep.subr.bf16.mxu1 (!%p1295_p3), %v1622_v47  ;;  %v1626_v53 = vld [vmem:[#allocation9 + $0x20] sm:$0xff] (!%p1295_p3)   ;;  %v783_v54 = vld [vmem:[#allocation2 + $0x38] sm:$0xff] (!%p1295_p3)  ;;  %v1615_v56 = vld [vmem:[#allocation3 + $0x8] sm:$0xff] (!%p1295_p3)  }
 0x26e   : > { %1478 = vmatpush3.bf16.msra.mxu1 (!%p1295_p3), %v1622_v47  ;;  %v782_v52 = vld [vmem:[#allocation2 + $0x30] sm:$0xff] (!%p1295_p3)  ;;  %v1617_v58 = vld [vmem:[#allocation3 + $0x18] sm:$0xff] (!%p1295_p3)   ;;  %v1618_v59 = vld [vmem:[#allocation3 + $0x20] sm:$0xff] (!%p1295_p3)  }
 0x26f   : > { %1448 = vmatpush3.bf16.msra.mxu0 (!%p1295_p3), %v777_v42  ;;  %1479 = vmatprep.subr.bf16.mxu1 (!%p1295_p3), %v1623_v48  ;;  %v1616_v57 = vld [vmem:[#allocation3 + $0x10] sm:$0xff] (!%p1295_p3)   ;;  %v1619_v60 = vld [vmem:[#allocation3 + $0x28] sm:$0xff] (!%p1295_p3)   ;;  %v1621_v62 = vld [vmem:[#allocation3 + $0x38] sm:$0xff] (!%p1295_p3)  }
 0x270   : > { %1449 = vmatprep.subr.bf16.mxu0 (!%p1295_p3), %v778_v44  ;;  %v1620_v61 = vld [vmem:[#allocation3 + $0x30] sm:$0xff] (!%p1295_p3)   ;;  %v1629_v0 = vld [vmem:[#allocation9 + $0x38] sm:$0xff] (!%p1295_p3)   ;;  %v1304_v41 = vld [vmem:[%s2051_s5] ss:$0 sm:$0xff] (!%p1295_p3) }
 0x271   : > { %v1628_v63 = vld [vmem:[#allocation9 + $0x30] sm:$0xff]  }
 0x272   : > { %1480 = vmatpush3.bf16.msra.mxu1 %v1623_v48 }
 0x273   : > { %1450 = vmatpush3.bf16.msra.mxu0 %v778_v44  ;;  %1481 = vmatprep.subr.bf16.mxu1 %v1624_v49 }
 0x274   : > { %1451 = vmatprep.subr.bf16.mxu0 %v779_v45 }
 0x276   : > { %1482 = vmatpush3.bf16.msra.mxu1 %v1624_v49 }
 0x277   : > { %1452 = vmatpush3.bf16.msra.mxu0 %v779_v45  ;;  %1483 = vmatprep.subr.bf16.mxu1 %v1625_v51 }
 0x278   : > { %1453 = vmatprep.subr.bf16.mxu0 %v780_v46 }
 0x27a   : > { %1484 = vmatpush3.bf16.msra.mxu1 %v1625_v51 }
 0x27b   : > { %1454 = vmatpush3.bf16.msra.mxu0 %v780_v46  ;;  %1485 = vmatprep.subr.bf16.mxu1 %v1626_v53 }
 0x27c   : > { %1455 = vmatprep.subr.bf16.mxu0 %v781_v50 }
 0x27e   : > { %1486 = vmatpush3.bf16.msra.mxu1 %v1626_v53 }
 0x27f   : > { %1456 = vmatpush3.bf16.msra.mxu0 %v781_v50  ;;  %1487 = vmatprep.subr.bf16.mxu1 %v1627_v55 }
 0x280   : > { %1457 = vmatprep.subr.bf16.mxu0 %v782_v52 }
 0x282   : > { %1488 = vmatpush3.bf16.msra.mxu1 %v1627_v55 }
 0x283   : > { %1458 = vmatpush3.bf16.msra.mxu0 %v782_v52  ;;  %1489 = vmatprep.subr.bf16.mxu1 %v1628_v63 }
 0x284   : > { %1459 = vmatprep.subr.bf16.mxu0 %v783_v54 }
 0x286   : > { %1490 = vmatpush3.bf16.msra.mxu1 %v1628_v63 }
 0x287   : > { %1460 = vmatpush3.bf16.msra.mxu0 %v783_v54  ;;  %1491 = vmatprep.subr.bf16.mxu1 %v1629_v0 }
 0x28a   : > { %1462 = vmatmul.mubr.bf16.vlgmr.msra.gmra.mrb[0].mxu0 %v1615_v56  ;;  %1492 = vmatpush3.bf16.msra.mxu1 %v1629_v0 }
 0x28b   : > { %1465 = vmatprep.mubr.bf16.mxu0 %v1616_v57 }
 0x292   : > { %1466 = vmatmul.mubr.bf16.gmra.mrb[4].mxu0 %v1617_v58 }
 0x293   : > { %1469 = vmatprep.mubr.bf16.mxu0 %v1618_v59 }
 0x29a   : > { %1470 = vmatmul.mubr.bf16.gmra.mrb[8].mxu0 %v1619_v60 }
 0x29b   : > { %1473 = vmatprep.mubr.bf16.mxu0 %v1620_v61 }
 0x2a2   : > { %1474 = vmatmul.mubr.bf16.gmra.mrb[12].mxu0 %v1621_v62 }
 0x35d   : > { %v1463_v1 = vpop.f32.mrb[0].mxu0 }
 0x35e   : > { %v866_v2 = vpop.f32.mrb[1].mxu0  ;;  %v931_v4 = vmax.f32 %v1463_v1, 0.0 }
 0x35f   : > { %v1464_v3 = vpop.f32.mrb[2].mxu0  ;;  %v929_v7 = vmax.f32 %v866_v2, 0.0 }
 0x360   : > { %v932_v5 = vmax.f32 %v1464_v3, 0.0  ;;  %v869_v6 = vpop.f32.mrb[3].mxu0 }
 0x361   : > { %v930_v8 = vmax.f32 %v869_v6, 0.0 }
 0x362   : > { %v946_v9 = vpack.c.bf16 %v932_v5, %v931_v4 }
 0x363   : > { %v945_v10 = vpack.c.bf16 %v930_v8, %v929_v7 }
 0x365   : > { %v1467_v11 = vpop.f32.mrb[4].mxu0  ;;  %1493 = vmatprep.mubr.bf16.mxu1 %v945_v10 }
 0x366   : > { %v882_v12 = vpop.f32.mrb[5].mxu0  ;;  %1494 = vmatmul.mubr.bf16.vlgmr.msra.gmra.mrb[0].mxu1 %v946_v9  ;;  %v935_v14 = vmax.f32 %v1467_v11, 0.0 }
 0x367   : > { %v1468_v13 = vpop.f32.mrb[6].mxu0  ;;  %v933_v17 = vmax.f32 %v882_v12, 0.0 }
 0x368   : > { %v936_v15 = vmax.f32 %v1468_v13, 0.0  ;;  %v885_v16 = vpop.f32.mrb[7].mxu0 }
 0x369   : > { %v934_v18 = vmax.f32 %v885_v16, 0.0 }
 0x36a   : > { %v948_v19 = vpack.c.bf16 %v936_v15, %v935_v14 }
 0x36b   : > { %v947_v20 = vpack.c.bf16 %v934_v18, %v933_v17 }
 0x36d   : > { %v1471_v21 = vpop.f32.mrb[8].mxu0  ;;  %1497 = vmatprep.mubr.bf16.mxu1 %v947_v20 }
 0x36e   : > { %v898_v22 = vpop.f32.mrb[9].mxu0  ;;  %1498 = vmatmul.mubr.bf16.gmra.mrb[4].mxu1 %v948_v19  ;;  %v939_v24 = vmax.f32 %v1471_v21, 0.0 }
 0x36f   : > { %v1472_v23 = vpop.f32.mrb[10].mxu0  ;;  %v937_v27 = vmax.f32 %v898_v22, 0.0 }
 0x370   : > { %v940_v25 = vmax.f32 %v1472_v23, 0.0  ;;  %v901_v26 = vpop.f32.mrb[11].mxu0 }
 0x371   : > { %v938_v28 = vmax.f32 %v901_v26, 0.0 }
 0x372   : > { %v950_v29 = vpack.c.bf16 %v940_v25, %v939_v24 }
 0x373   : > { %v949_v30 = vpack.c.bf16 %v938_v28, %v937_v27 }
 0x375   : > { %v1475_v31 = vpop.f32.mrb[12].mxu0  ;;  %1501 = vmatprep.mubr.bf16.mxu1 %v949_v30 }
 0x376   : > { %v914_v32 = vpop.f32.mrb[13].mxu0  ;;  %1502 = vmatmul.mubr.bf16.gmra.mrb[8].mxu1 %v950_v29  ;;  %v943_v34 = vmax.f32 %v1475_v31, 0.0 }
 0x377   : > { %v1476_v33 = vpop.f32.mrb[14].mxu0  ;;  %v941_v37 = vmax.f32 %v914_v32, 0.0 }
 0x378   : > { %v944_v35 = vmax.f32 %v1476_v33, 0.0  ;;  %v917_v36 = vpop.f32.mrb[15].mxu0 }
 0x379   : > { %v942_v38 = vmax.f32 %v917_v36, 0.0 }
 0x37a   : > { %v952_v39 = vpack.c.bf16 %v944_v35, %v943_v34 }
 0x37b   : > { %v951_v40 = vpack.c.bf16 %v942_v38, %v941_v37 }
 0x37d   : > { %1505 = vmatprep.mubr.bf16.mxu1 %v951_v40 }
 0x37e   : > { %1506 = vmatmul.mubr.bf16.gmra.mrb[12].mxu1 %v952_v39 }
 0x439   : > { %v1495_v42 = vpop.f32.mrb[0].mxu1 }
 0x43a   : > { %v1067_v43 = vadd.f32 %v1495_v42, %v1304_v41  ;;  %v1058_v44 = vpop.f32.mrb[1].mxu1 }
 0x43b   : > { %v1059_v45 = vadd.f32 %v1304_v41, %v1058_v44  ;;  %v1496_v46 = vpop.f32.mrb[2].mxu1 }
 0x43c   : > { %1123 = vst [vmem:[#allocation11 + $0x10] sm:$0xff] %v1067_v43  ;;  %v1070_v47 = vadd.f32 %v1496_v46, %v1304_v41  ;;  %v1061_v48 = vpop.f32.mrb[3].mxu1 }
 0x43d   : > { %1121 = vst [vmem:[#allocation11] sm:$0xff] %v1059_v45  ;;  %v1062_v49 = vadd.f32 %v1304_v41, %v1061_v48 }
 0x43e   : > { %1124 = vst [vmem:[#allocation11 + $0x18] sm:$0xff] %v1070_v47 }
 0x43f   : > { %1122 = vst [vmem:[#allocation11 + $0x8] sm:$0xff] %v1062_v49 }
 0x441   : > { %v1499_v50 = vpop.f32.mrb[4].mxu1 }
 0x442   : > { %v1083_v51 = vadd.f32 %v1499_v50, %v1304_v41  ;;  %v1074_v52 = vpop.f32.mrb[5].mxu1 }
 0x443   : > { %v1075_v53 = vadd.f32 %v1304_v41, %v1074_v52  ;;  %v1500_v54 = vpop.f32.mrb[6].mxu1 }
 0x444   : > { %1127 = vst [vmem:[#allocation11 + $0x30] sm:$0xff] %v1083_v51  ;;  %v1086_v55 = vadd.f32 %v1500_v54, %v1304_v41  ;;  %v1077_v56 = vpop.f32.mrb[7].mxu1 }
 0x445   : > { %1125 = vst [vmem:[#allocation11 + $0x20] sm:$0xff] %v1075_v53  ;;  %v1078_v57 = vadd.f32 %v1304_v41, %v1077_v56 }
 0x446   : > { %1128 = vst [vmem:[#allocation11 + $0x38] sm:$0xff] %v1086_v55 }
 0x447   : > { %1126 = vst [vmem:[#allocation11 + $0x28] sm:$0xff] %v1078_v57 }
 0x449   : > { %v1503_v58 = vpop.f32.mrb[8].mxu1 }
 0x44a   : > { %v1099_v59 = vadd.f32 %v1503_v58, %v1304_v41  ;;  %v1090_v60 = vpop.f32.mrb[9].mxu1 }
 0x44b   : > { %v1091_v61 = vadd.f32 %v1304_v41, %v1090_v60  ;;  %v1504_v62 = vpop.f32.mrb[10].mxu1 }
 0x44c   : > { %1131 = vst [vmem:[#allocation11 + $0x50] sm:$0xff] %v1099_v59  ;;  %v1102_v63 = vadd.f32 %v1504_v62, %v1304_v41  ;;  %v1093_v0 = vpop.f32.mrb[11].mxu1 }
 0x44d   : > { %1129 = vst [vmem:[#allocation11 + $0x40] sm:$0xff] %v1091_v61  ;;  %v1094_v1 = vadd.f32 %v1304_v41, %v1093_v0 }
 0x44e   : > { %1132 = vst [vmem:[#allocation11 + $0x58] sm:$0xff] %v1102_v63 }
 0x44f   : > { %1130 = vst [vmem:[#allocation11 + $0x48] sm:$0xff] %v1094_v1 }
 0x451   : > { %v1507_v2 = vpop.f32.mrb[12].mxu1 }
 0x452   : > { %v1115_v3 = vadd.f32 %v1507_v2, %v1304_v41  ;;  %v1106_v4 = vpop.f32.mrb[13].mxu1 }
 0x453   : > { %v1107_v5 = vadd.f32 %v1304_v41, %v1106_v4  ;;  %v1508_v6 = vpop.f32.mrb[14].mxu1 }
 0x454   : > { %1135 = vst [vmem:[#allocation11 + $0x70] sm:$0xff] %v1115_v3  ;;  %v1118_v7 = vadd.f32 %v1508_v6, %v1304_v41  ;;  %v1109_v8 = vpop.f32.mrb[15].mxu1 }
 0x455   : > { %1133 = vst [vmem:[#allocation11 + $0x60] sm:$0xff] %v1107_v5  ;;  %v1110_v9 = vadd.f32 %v1304_v41, %v1109_v8 }
 0x456   : > { %1136 = vst [vmem:[#allocation11 + $0x78] sm:$0xff] %v1118_v7 }
 0x457   : > { %1134 = vst [vmem:[#allocation11 + $0x68] sm:$0xff] %v1110_v9 }
 0x458 PF: > { %p2012_p6 = scmp.eq.s32.totalorder %s1257_s24, 1  ;;  %s1814_s18 = smov [#allocation11]  }
 0x459   : > { %s1152_s19 = sshll.u32 %s1814_s18, 4  ;;  %s1153_s19 = int_to_ptr.vmem [resolvable:$true] %s1152_s19 }
 0x45a   : > { %s1742_s20 = scalar_lea.vmem %s1153_s19, 2048  ;;  %s1748_s25 = scalar_lea.vmem %s1153_s19, 4096 }
 0x45b   : > { %p1743_p9 = scmp.ne.s32.totalorder %s1153_s19, %s1742_s20  ;;  %p1749_p12 = scmp.lt.s32.totalorder %s1153_s19, %s1153_s19 }
 0x45c   : > { %p1750_p13 = scmp.lt.s32.totalorder %s1748_s25, %s1742_s20 }
 0x45d   : > { %p1744_p10 = pnand %p1743_p9, %p2012_p6 }
 0x45e   : > { %p1751_p0 = por %p1750_p13, %p1749_p12 }
 0x45f   : > { %p1745_p11 = pneg %p1744_p10 }
 0x461   : > { %p1752_p1 = pnand %p1751_p0, %p1745_p11 }
 0x463   : > { %1755 = shalt.err (!%p1752_p1)
}
 0x464   : > { %s1756_s9 = scalar_lea.hbm %s2052_s6, 2048 }
 0x465   : > { %p1757_p4 = scmp.ne.s32.totalorder %s2052_s6, %s1756_s9  ;;  %p1762_p8 = scmp.lt.u32.totalorder %s1756_s9, %s2052_s6 }
 0x467   : > { %p1758_p7 = pnand %p1757_p4, %p2012_p6 }
 0x469   : > { %p1759_p2 = pneg %p1758_p7 }
 0x46b   : > { %p1764_p5 = pnand %p1762_p8, %p1759_p2 }
 0x46d   : > { %1767 = shalt.err (!%p1764_p5)
}
 0x46e   : > { %s1815_s17 = smov 128   ;;  %s1816_s29 = smov 8  }
 0x46f   : > { %1526 = dma.vmem_to_hbm [thread:$0]  (%p2012_p6), %s1153_s19, 2048, %s2052_s6, [#allocation5], %s1815_s17, %s1815_s17, %s1816_s29  }
 0x470 PF: > { %p1555_p3 = scmp.ge.s32.totalorder %s1806_s23, 2  ;;  %s2065_s10 = sadd.s32 4294967294, %s1806_s23  }
 0x471   : > { %p1556_p9 = scmp.eq.s32.totalorder %s2065_s10, 1 }
 0x473   : > { %p1543_p10 = pnand %p1556_p9, %p1555_p3 }
 0x475   : > { %1793 = dma.done.wait (!%p1543_p10), [#allocation5], 2048  }
 0x476   : > { %1795 = vsyncadd (!%p1543_p10), [#allocation5], 4294965248  ;;  %s22_s23 = sadd.s32 1, %s1806_s23   ;;  %s2066_s21 = smov %s1802_s22 }
 0x477   : > { %p19_p11 = scmp.ge.s32.totalorder %s22_s23, 4   ;;  %s2067_s22 = smov %s2069_s7 }
 0x479   :  { %21 = sbr.rel (!%p19_p11) target bundleno = 6 (0x6), region = 104 }
 0x480   :  { %1173 = vsyncpa [#allocation4], 1 }
 0x481   :  { %1175 = vsyncpa [#allocation4 + $0x1], 1 }
 0x482   :  { %1176 = vsyncpa [#allocation7], 1 }
 0x483   :  { %1177 = vsyncpa [#allocation10], 1 }
 0x484   :  { %1178 = vsyncpa [#allocation5], 1 }
 0x485   :  { %1180 = vsyncpa [#allocation5 + $0x1], 1 }

// kernel: tpu_custom_call.1
= control target key start
LH: loop header
LB: loop body
LE: loop exit
PB: predicated region body
PF: predicated region fallthrough
CT: control target
= control target key end

     0   :  { %11 = vsyncpa [#allocation4], 0  ;;  %s2046_s0 = inlined_call_operand.hbm [shape: bf16[128,128], index: 0, kind: input, shape index: {}]   ;;  %s2047_s1 = inlined_call_operand.hbm [shape: bf16[128,128], index: 1, kind: input, shape index: {}]   ;;  %s2048_s2 = inlined_call_operand.hbm [shape: bf16[128,128], index: 2, kind: input, shape index: {}]   ;;  %s2049_s3 = inlined_call_operand.vmem [shape: f32[1,128], index: 3, kind: input, shape index: {}]   ;;  %s2050_s4 = inlined_call_operand.hbm [shape: bf16[128,128], index: 4, kind: input, shape index: {}]   ;;  %s2051_s5 = inlined_call_operand.vmem [shape: f32[1,128], index: 5, kind: input, shape index: {}]   ;;  %s2052_s6 = inlined_call_operand.hbm [shape: f32[128,128], index: 6, kind: output, shape index: {}]  }
   0x1   :  { %12 = vsyncpa [#allocation7], 0 }
   0x2   :  { %13 = vsyncpa [#allocation10], 0 }
   0x3   :  { %14 = vsyncpa [#allocation5], 0 }
   0x4   :  { %16 = vsyncpa [#allocation5 + $0x1], 0  ;;  %s1852_s21 = smov 0   ;;  %s1854_s22 = smov 0  }
   0x5   :  { %s1856_s23 = smov 0  }
   0x6 LB: > { %s1257_s24 = sadd.s32 4294967295, %s1806_s23   ;;  %p1259_p0 = scmp.ge.s32.totalorder %s1806_s23, 1  ;;  %s1806_s23 = sphi %s1856_s23, %s22_s23   ;;  %s1802_s22 = sphi %s1854_s22, %s2067_s22   ;;  %s1798_s21 = sphi %s1852_s21, %s2066_s21  }
   0x7   : > { %p193_p1 = scmp.lt.s32.totalorder %s1806_s23, 3  ;;  %p1873_p2 = scmp.eq.s32.totalorder %s1257_s24, 0 }
   0x8   : > { %s1808_s28 = smov [#allocation6]   ;;  %s34_s7 = sadd.s32 1, %s1802_s22 }
   0x9   : > { %s2056_s26 = scalar_select %p1873_p2, 1, 0 }
   0xa   : > { %p1877_p3 = pnand %p1259_p0, %p193_p1  ;;  %s218_s29 = sshll.u32 %s1808_s28, 4  ;;  %s219_s29 = int_to_ptr.vmem [resolvable:$true] %s218_s29 }
   0xb   : > { %p1890_p6 = scmp.ge.s32.totalorder %s34_s7, 2  ;;  %s1630_s11 = scalar_lea.hbm %s2047_s1, 1024 }
   0xc   : > { %s2057_s27 = scalar_select %p1877_p3, 1, 0 }
   0xd   : > { %p1529_p4 = pneg %p1877_p3  ;;  %p1631_p7 = scmp.ne.s32.totalorder %s2047_s1, %s1630_s11 }
   0xe   : > { %s2059_s8 = scalar_select %p1890_p6, 1, 0 }
   0xf   : > { %p1885_p5 = pnand %p1873_p2, %p1529_p4  ;;  %p1637_p11 = scmp.lt.u32.totalorder %s1630_s11, %s2047_s1 }
  0x11   : > { %p1902_p8 = pneg %p1885_p5 }
  0x13   : > { %p1633_p9 = pnand %p1902_p8, %p1631_p7 }
  0x15   : > { %p1634_p10 = pneg %p1633_p9 }
  0x17   : > { %p1639_p12 = pnand %p1637_p11, %p1634_p10 }
  0x19   : > { %1642 = shalt.err (!%p1639_p12)
}
  0x1a   : > { %s1643_s17 = scalar_lea.vmem %s219_s29, 1024  ;;  %p1651_p4 = scmp.lt.s32.totalorder %s219_s29, %s219_s29 }
  0x1b   : > { %p1644_p13 = scmp.ne.s32.totalorder %s219_s29, %s1643_s17  ;;  %p1652_p2 = scmp.lt.s32.totalorder %s1643_s17, %s1643_s17 }
  0x1d   : > { %p1646_p0 = pnand %p1644_p13, %p1902_p8  ;;  %p1653_p3 = por %p1652_p2, %p1651_p4 }
  0x1f   : > { %p1647_p1 = pneg %p1646_p0 }
  0x21   : > { %p1654_p6 = pnand %p1653_p3, %p1647_p1 }
  0x23   : > { %1657 = shalt.err (!%p1654_p6)
}
  0x24   : > { %s1809_s18 = smov 64   ;;  %s1810_s19 = smov 4  }
  0x25   : > { %1535 = dma.hbm_to_vmem [thread:$0]  (!%p1885_p5), %s2047_s1, 1024, %s219_s29, [#allocation7], %s1809_s18, %s1809_s18, %s1810_s19  }
  0x26   : > { %p2061_p7 = scmp.ne.s32.totalorder %s2059_s8, 0  ;;  %s1811_s9 = smov [#allocation3]  }
  0x27   : > { %s205_s10 = sshll.u32 %s1811_s9, 4  ;;  %s1812_s11 = smov [#allocation8]   ;;  %s206_s10 = int_to_ptr.vmem [resolvable:$true] %s205_s10 }
  0x28   : > { %s2069_s7 = smov (%p2061_p7, %s34_s7), 0  ;;  %s231_s12 = sshll.u32 %s1812_s11, 4  ;;  %s232_s12 = int_to_ptr.vmem [resolvable:$true] %s231_s12 }
  0x29   : > { %s1658_s16 = scalar_lea.hbm %s2046_s0, 1024 }
  0x2a   : > { %p1659_p2 = scmp.ne.s32.totalorder %s2046_s0, %s1658_s16  ;;  %p1665_p9 = scmp.lt.u32.totalorder %s1658_s16, %s2046_s0 }
  0x2c   : > { %p1661_p3 = pnand %p1659_p2, %p1902_p8 }
  0x2e   : > { %p1662_p6 = pneg %p1661_p3 }
  0x30   : > { %p1667_p10 = pnand %p1665_p9, %p1662_p6 }
  0x32   : > { %1670 = shalt.err (!%p1667_p10)
}
  0x33   : > { %s1671_s20 = scalar_lea.vmem %s206_s10, 1024  ;;  %p1679_p0 = scmp.lt.s32.totalorder %s206_s10, %s206_s10 }
  0x34   : > { %p1672_p11 = scmp.ne.s32.totalorder %s206_s10, %s1671_s20  ;;  %p1680_p1 = scmp.lt.s32.totalorder %s1671_s20, %s1671_s20 }
  0x36   : > { %p1674_p12 = pnand %p1672_p11, %p1902_p8  ;;  %p1681_p4 = por %p1680_p1, %p1679_p0 }
  0x38   : > { %p1675_p13 = pneg %p1674_p12 }
  0x3a   : > { %p1682_p7 = pnand %p1681_p4, %p1675_p13 }
  0x3c   : > { %1685 = shalt.err (!%p1682_p7)
}
  0x3d   : > { %1532 = dma.hbm_to_vmem [thread:$0]  (!%p1885_p5), %s2046_s0, 1024, %s206_s10, [#allocation4], %s1809_s18, %s1809_s18, %s1810_s19  }
  0x3e   : > { %s1686_s13 = scalar_lea.hbm %s2048_s2, 1024 }
  0x3f   : > { %p1687_p2 = scmp.ne.s32.totalorder %s2048_s2, %s1686_s13  ;;  %p1693_p9 = scmp.lt.u32.totalorder %s1686_s13, %s2048_s2 }
  0x41   : > { %p1689_p3 = pnand %p1687_p2, %p1902_p8 }
  0x43   : > { %p1690_p6 = pneg %p1689_p3 }
  0x45   : > { %p1695_p10 = pnand %p1693_p9, %p1690_p6 }
  0x47   : > { %1698 = shalt.err (!%p1695_p10)
}
  0x48   : > { %s1699_s8 = scalar_lea.vmem %s232_s12, 1024  ;;  %p1707_p0 = scmp.lt.s32.totalorder %s232_s12, %s232_s12 }
  0x49   : > { %p1700_p11 = scmp.ne.s32.totalorder %s232_s12, %s1699_s8  ;;  %p1708_p1 = scmp.lt.s32.totalorder %s1699_s8, %s1699_s8 }
  0x4b   : > { %p1702_p12 = pnand %p1700_p11, %p1902_p8  ;;  %p1709_p4 = por %p1708_p1, %p1707_p0 }
  0x4d   : > { %p1703_p13 = pneg %p1702_p12 }
  0x4f   : > { %p1710_p7 = pnand %p1709_p4, %p1703_p13 }
  0x51   : > { %1713 = shalt.err (!%p1710_p7)
}
  0x52   : > { %1538 = dma.hbm_to_vmem [thread:$0]  (!%p1885_p5), %s2048_s2, 1024, %s232_s12, [#allocation7], %s1809_s18, %s1809_s18, %s1810_s19  }
  0x53   : > { %s1813_s25 = smov [#allocation9]   ;;  %s1714_s13 = scalar_lea.hbm %s2050_s4, 1024 }
  0x54   : > { %s247_s28 = sshll.u32 %s1813_s25, 4  ;;  %p1715_p2 = scmp.ne.s32.totalorder %s2050_s4, %s1714_s13  ;;  %s248_s28 = int_to_ptr.vmem [resolvable:$true] %s247_s28 }
  0x55   : > { %p1721_p9 = scmp.lt.u32.totalorder %s1714_s13, %s2050_s4 }
  0x56   : > { %p1717_p3 = pnand %p1715_p2, %p1902_p8 }
  0x58   : > { %p1718_p6 = pneg %p1717_p3 }
  0x5a   : > { %p1723_p10 = pnand %p1721_p9, %p1718_p6 }
  0x5c   : > { %1726 = shalt.err (!%p1723_p10)
}
  0x5d   : > { %s1727_s12 = scalar_lea.vmem %s248_s28, 1024  ;;  %p1735_p0 = scmp.lt.s32.totalorder %s248_s28, %s248_s28 }
  0x5e   : > { %p1728_p11 = scmp.ne.s32.totalorder %s248_s28, %s1727_s12  ;;  %p1736_p1 = scmp.lt.s32.totalorder %s1727_s12, %s1727_s12 }
  0x60   : > { %p1730_p12 = pnand %p1728_p11, %p1902_p8  ;;  %p1737_p4 = por %p1736_p1, %p1735_p0 }
  0x62   : > { %p1731_p13 = pneg %p1730_p12 }
  0x64   : > { %p1738_p7 = pnand %p1737_p4, %p1731_p13 }
  0x66   : > { %1741 = shalt.err (!%p1738_p7)
}
  0x67   : > { %1541 = dma.hbm_to_vmem [thread:$0]  (!%p1885_p5), %s2050_s4, 1024, %s248_s28, [#allocation10], %s1809_s18, %s1809_s18, %s1810_s19  }
  0x68   : > { %p2062_p2 = scmp.ne.s32.totalorder %s2057_s27, 0 }
  0x69   : > { %p2063_p8 = scmp.ne.s32.totalorder (!%p2062_p2), %s2056_s26, 0 }
  0x6a   : > { %266 = sbr.rel (%p2062_p2) target bundleno = 1136 (0x470), region = 44 }
  0x71   : > { %1781 = dma.done.wait (%p2063_p8), [#allocation4], 1024  }
  0x72   : > { %1783 = vsyncadd (%p2063_p8), [#allocation4], 4294966272 }
  0x73   : > { %1785 = dma.done.wait (%p2063_p8), [#allocation7], 2048  }
  0x74   : > { %1787 = vsyncadd (%p2063_p8), [#allocation7], 4294965248 }
  0x75   : > { %1789 = dma.done.wait (%p2063_p8), [#allocation10], 1024  }
  0x76   : > { %1791 = vsyncadd (%p2063_p8), [#allocation10], 4294966272  ;;  %p1269_p5 = scmp.ne.s32.totalorder %s1798_s21, 0 }
  0x77   : > { %v1590_v0 = vld [vmem:[#allocation6] sm:$0xff] (!%p1269_p5)   ;;  %v1591_v1 = vld [vmem:[#allocation6 + $0x8] sm:$0xff] (!%p1269_p5)   ;;  %v1592_v2 = vld [vmem:[#allocation6 + $0x10] sm:$0xff] (!%p1269_p5)  }
  0x78   : > { %310 = sbr.rel (%p1269_p5) target bundleno = 616 (0x268), region = 64  ;;  %1381 = vmatprep.subr.bf16.mxu0 (!%p1269_p5), %v1590_v0  ;;  %v1593_v3 = vld [vmem:[#allocation6 + $0x18] sm:$0xff] (!%p1269_p5)   ;;  %v1598_v4 = vld [vmem:[#allocation3] sm:$0xff] (!%p1269_p5)   ;;  %v1595_v6 = vld [vmem:[#allocation6 + $0x28] sm:$0xff] (!%p1269_p5)  }
  0x79   : > { %1382 = vmatpush3.bf16.msra.mxu0 (!%p1269_p5), %v1590_v0  ;;  %1397 = vmatprep.mubr.bf16.mxu0 (!%p1269_p5), %v1598_v4  ;;  %v1594_v5 = vld [vmem:[#allocation6 + $0x20] sm:$0xff] (!%p1269_p5)   ;;  %v1607_v8 = vld [vmem:[#allocation8 + $0x8] sm:$0xff] (!%p1269_p5)   ;;  %v1596_v9 = vld [vmem:[#allocation6 + $0x30] sm:$0xff] (!%p1269_p5)  }
  0x7a   : > { %1383 = vmatprep.subr.bf16.mxu0 (!%p1269_p5), %v1591_v1  ;;  %v1606_v7 = vld [vmem:[#allocation8] sm:$0xff] (!%p1269_p5)   ;;  %v1608_v10 = vld [vmem:[#allocation8 + $0x10] sm:$0xff] (!%p1269_p5)   ;;  %v1597_v11 = vld [vmem:[#allocation6 + $0x38] sm:$0xff] (!%p1269_p5)  }
  0x7b   : > { %1413 = vmatprep.subr.bf16.mxu1 (!%p1269_p5), %v1606_v7  ;;  %v1609_v12 = vld [vmem:[#allocation8 + $0x18] sm:$0xff] (!%p1269_p5)   ;;  %v1610_v13 = vld [vmem:[#allocation8 + $0x20] sm:$0xff] (!%p1269_p5)   ;;  %v1599_v14 = vld [vmem:[#allocation3 + $0x8] sm:$0xff] (!%p1269_p5)  }
  0x7c   : > { %1414 = vmatpush3.bf16.msra.mxu1 (!%p1269_p5), %v1606_v7  ;;  %v1600_v15 = vld [vmem:[#allocation3 + $0x10] sm:$0xff] (!%p1269_p5)   ;;  %v1611_v16 = vld [vmem:[#allocation8 + $0x28] sm:$0xff] (!%p1269_p5)   ;;  %v1601_v17 = vld [vmem:[#allocation3 + $0x18] sm:$0xff] (!%p1269_p5)  }
  0x7d   : > { %1384 = vmatpush3.bf16.msra.mxu0 (!%p1269_p5), %v1591_v1  ;;  %1415 = vmatprep.subr.bf16.mxu1 (!%p1269_p5), %v1607_v8  ;;  %v1602_v18 = vld [vmem:[#allocation3 + $0x20] sm:$0xff] (!%p1269_p5)   ;;  %v1603_v19 = vld [vmem:[#allocation3 + $0x28] sm:$0xff] (!%p1269_p5)   ;;  %v1604_v20 = vld [vmem:[#allocation3 + $0x30] sm:$0xff] (!%p1269_p5)  }
  0x7e   : > { %1385 = vmatprep.subr.bf16.mxu0 (!%p1269_p5), %v1592_v2  ;;  %v1605_v21 = vld [vmem:[#allocation3 + $0x38] sm:$0xff] (!%p1269_p5)   ;;  %v1612_v22 = vld [vmem:[#allocation8 + $0x30] sm:$0xff] (!%p1269_p5)   ;;  %v1286_v1 = vld [vmem:[%s2049_s3] ss:$0 sm:$0xff] (!%p1269_p5) }
  0x7f   : > { %v1613_v23 = vld [vmem:[#allocation8 + $0x38] sm:$0xff]  }
  0x80   : > { %1416 = vmatpush3.bf16.msra.mxu1 %v1607_v8 }
  0x81   : > { %1386 = vmatpush3.bf16.msra.mxu0 %v1592_v2  ;;  %1417 = vmatprep.subr.bf16.mxu1 %v1608_v10 }
  0x82   : > { %1387 = vmatprep.subr.bf16.mxu0 %v1593_v3 }
  0x84   : > { %1418 = vmatpush3.bf16.msra.mxu1 %v1608_v10 }
  0x85   : > { %1388 = vmatpush3.bf16.msra.mxu0 %v1593_v3  ;;  %1419 = vmatprep.subr.bf16.mxu1 %v1609_v12 }
  0x86   : > { %1389 = vmatprep.subr.bf16.mxu0 %v1594_v5 }
  0x88   : > { %1420 = vmatpush3.bf16.msra.mxu1 %v1609_v12 }
  0x89   : > { %1390 = vmatpush3.bf16.msra.mxu0 %v1594_v5  ;;  %1421 = vmatprep.subr.bf16.mxu1 %v1610_v13 }
  0x8a   : > { %1391 = vmatprep.subr.bf16.mxu0 %v1595_v6 }
  0x8c   : > { %1422 = vmatpush3.bf16.msra.mxu1 %v1610_v13 }
  0x8d   : > { %1392 = vmatpush3.bf16.msra.mxu0 %v1595_v6  ;;  %1423 = vmatprep.subr.bf16.mxu1 %v1611_v16 }
  0x8e   : > { %1393 = vmatprep.subr.bf16.mxu0 %v1596_v9 }
  0x90   : > { %1424 = vmatpush3.bf16.msra.mxu1 %v1611_v16 }
  0x91   : > { %1394 = vmatpush3.bf16.msra.mxu0 %v1596_v9  ;;  %1425 = vmatprep.subr.bf16.mxu1 %v1612_v22 }
  0x92   : > { %1395 = vmatprep.subr.bf16.mxu0 %v1597_v11 }
  0x94   : > { %1426 = vmatpush3.bf16.msra.mxu1 %v1612_v22 }
  0x95   : > { %1396 = vmatpush3.bf16.msra.mxu0 %v1597_v11  ;;  %1427 = vmatprep.subr.bf16.mxu1 %v1613_v23 }
  0x98   : > { %1398 = vmatmul.mubr.bf16.vlgmr.msra.gmra.mrb[0].mxu0 %v1599_v14  ;;  %1428 = vmatpush3.bf16.msra.mxu1 %v1613_v23 }
  0x99   : > { %1401 = vmatprep.mubr.bf16.mxu0 %v1600_v15 }
  0xa0   : > { %1402 = vmatmul.mubr.bf16.gmra.mrb[4].mxu0 %v1601_v17 }
  0xa1   : > { %1405 = vmatprep.mubr.bf16.mxu0 %v1602_v18 }
  0xa8   : > { %1406 = vmatmul.mubr.bf16.gmra.mrb[8].mxu0 %v1603_v19 }
  0xa9   : > { %1409 = vmatprep.mubr.bf16.mxu0 %v1604_v20 }
  0xb0   : > { %1410 = vmatmul.mubr.bf16.gmra.mrb[12].mxu0 %v1605_v21 }
 0x16b   : > { %v1399_v24 = vpop.f32.mrb[0].mxu0 }
 0x16c   : > { %v477_v25 = vpop.f32.mrb[1].mxu0  ;;  %v542_v27 = vmax.f32 %v1399_v24, 0.0 }
 0x16d   : > { %v1400_v26 = vpop.f32.mrb[2].mxu0  ;;  %v540_v30 = vmax.f32 %v477_v25, 0.0 }
 0x16e   : > { %v543_v28 = vmax.f32 %v1400_v26, 0.0  ;;  %v480_v29 = vpop.f32.mrb[3].mxu0 }
 0x16f   : > { %v541_v31 = vmax.f32 %v480_v29, 0.0 }
 0x170   : > { %v557_v32 = vpack.c.bf16 %v543_v28, %v542_v27 }
 0x171   : > { %v556_v33 = vpack.c.bf16 %v541_v31, %v540_v30 }
 0x173   : > { %v1403_v34 = vpop.f32.mrb[4].mxu0  ;;  %1429 = vmatprep.mubr.bf16.mxu1 %v556_v33 }
 0x174   : > { %v493_v35 = vpop.f32.mrb[5].mxu0  ;;  %1430 = vmatmul.mubr.bf16.vlgmr.msra.gmra.mrb[0].mxu1 %v557_v32  ;;  %v546_v37 = vmax.f32 %v1403_v34, 0.0 }
 0x175   : > { %v1404_v36 = vpop.f32.mrb[6].mxu0  ;;  %v544_v40 = vmax.f32 %v493_v35, 0.0 }
 0x176   : > { %v547_v38 = vmax.f32 %v1404_v36, 0.0  ;;  %v496_v39 = vpop.f32.mrb[7].mxu0 }
 0x177   : > { %v545_v41 = vmax.f32 %v496_v39, 0.0 }
 0x178   : > { %v559_v42 = vpack.c.bf16 %v547_v38, %v546_v37 }
 0x179   : > { %v558_v43 = vpack.c.bf16 %v545_v41, %v544_v40 }
 0x17b   : > { %v1407_v44 = vpop.f32.mrb[8].mxu0  ;;  %1433 = vmatprep.mubr.bf16.mxu1 %v558_v43 }
 0x17c   : > { %v509_v45 = vpop.f32.mrb[9].mxu0  ;;  %1434 = vmatmul.mubr.bf16.gmra.mrb[4].mxu1 %v559_v42  ;;  %v550_v47 = vmax.f32 %v1407_v44, 0.0 }
 0x17d   : > { %v1408_v46 = vpop.f32.mrb[10].mxu0  ;;  %v548_v50 = vmax.f32 %v509_v45, 0.0 }
 0x17e   : > { %v551_v48 = vmax.f32 %v1408_v46, 0.0  ;;  %v512_v49 = vpop.f32.mrb[11].mxu0 }
 0x17f   : > { %v549_v51 = vmax.f32 %v512_v49, 0.0 }
 0x180   : > { %v561_v52 = vpack.c.bf16 %v551_v48, %v550_v47 }
 0x181   : > { %v560_v53 = vpack.c.bf16 %v549_v51, %v548_v50 }
 0x183   : > { %v1411_v54 = vpop.f32.mrb[12].mxu0  ;;  %1437 = vmatprep.mubr.bf16.mxu1 %v560_v53 }
 0x184   : > { %v525_v55 = vpop.f32.mrb[13].mxu0  ;;  %1438 = vmatmul.mubr.bf16.gmra.mrb[8].mxu1 %v561_v52  ;;  %v554_v57 = vmax.f32 %v1411_v54, 0.0 }
 0x185   : > { %v1412_v56 = vpop.f32.mrb[14].mxu0  ;;  %v552_v60 = vmax.f32 %v525_v55, 0.0 }
 0x186   : > { %v555_v58 = vmax.f32 %v1412_v56, 0.0  ;;  %v528_v59 = vpop.f32.mrb[15].mxu0 }
 0x187   : > { %v553_v61 = vmax.f32 %v528_v59, 0.0 }
 0x188   : > { %v563_v62 = vpack.c.bf16 %v555_v58, %v554_v57 }
 0x189   : > { %v562_v63 = vpack.c.bf16 %v553_v61, %v552_v60 }
 0x18b   : > { %1441 = vmatprep.mubr.bf16.mxu1 %v562_v63 }
 0x18c   : > { %1442 = vmatmul.mubr.bf16.gmra.mrb[12].mxu1 %v563_v62 }
 0x247   : > { %v1431_v0 = vpop.f32.mrb[0].mxu1 }
 0x248   : > { %v669_v2 = vpop.f32.mrb[1].mxu1  ;;  %v678_v4 = vadd.f32 %v1431_v0, %v1286_v1 }
 0x249   : > { %v1432_v3 = vpop.f32.mrb[2].mxu1  ;;  %v670_v7 = vadd.f32 %v1286_v1, %v669_v2 }
 0x24a   : > { %v681_v5 = vadd.f32 %v1432_v3, %v1286_v1  ;;  %v672_v6 = vpop.f32.mrb[3].mxu1 }
 0x24b   : > { %v673_v8 = vadd.f32 %v1286_v1, %v672_v6 }
 0x24c   : > { %v733_v9 = vpack.c.bf16 %v681_v5, %v678_v4 }
 0x24d   : > { %v732_v10 = vpack.c.bf16 %v673_v8, %v670_v7 }
 0x24e   : > { %745 = vst [vmem:[#allocation2 + $0x8] sm:$0xff] %v733_v9 }
 0x24f   : > { %744 = vst [vmem:[#allocation2] sm:$0xff] %v732_v10  ;;  %v1435_v11 = vpop.f32.mrb[4].mxu1 }
 0x250   : > { %v685_v12 = vpop.f32.mrb[5].mxu1  ;;  %v694_v14 = vadd.f32 %v1435_v11, %v1286_v1 }
 0x251   : > { %v1436_v13 = vpop.f32.mrb[6].mxu1  ;;  %v686_v17 = vadd.f32 %v1286_v1, %v685_v12 }
 0x252   : > { %v697_v15 = vadd.f32 %v1436_v13, %v1286_v1  ;;  %v688_v16 = vpop.f32.mrb[7].mxu1 }
 0x253   : > { %v689_v18 = vadd.f32 %v1286_v1, %v688_v16 }
 0x254   : > { %v735_v19 = vpack.c.bf16 %v697_v15, %v694_v14 }
 0x255   : > { %v734_v20 = vpack.c.bf16 %v689_v18, %v686_v17 }
 0x256   : > { %747 = vst [vmem:[#allocation2 + $0x18] sm:$0xff] %v735_v19 }
 0x257   : > { %746 = vst [vmem:[#allocation2 + $0x10] sm:$0xff] %v734_v20  ;;  %v1439_v21 = vpop.f32.mrb[8].mxu1 }
 0x258   : > { %v701_v22 = vpop.f32.mrb[9].mxu1  ;;  %v710_v24 = vadd.f32 %v1439_v21, %v1286_v1 }
 0x259   : > { %v1440_v23 = vpop.f32.mrb[10].mxu1  ;;  %v702_v27 = vadd.f32 %v1286_v1, %v701_v22 }
 0x25a   : > { %v713_v25 = vadd.f32 %v1440_v23, %v1286_v1  ;;  %v704_v26 = vpop.f32.mrb[11].mxu1 }
 0x25b   : > { %v705_v28 = vadd.f32 %v1286_v1, %v704_v26 }
 0x25c   : > { %v737_v29 = vpack.c.bf16 %v713_v25, %v710_v24 }
 0x25d   : > { %v736_v30 = vpack.c.bf16 %v705_v28, %v702_v27 }
 0x25e   : > { %749 = vst [vmem:[#allocation2 + $0x28] sm:$0xff] %v737_v29 }
 0x25f   : > { %748 = vst [vmem:[#allocation2 + $0x20] sm:$0xff] %v736_v30  ;;  %v1443_v31 = vpop.f32.mrb[12].mxu1 }
 0x260   : > { %v717_v32 = vpop.f32.mrb[13].mxu1  ;;  %v726_v34 = vadd.f32 %v1443_v31, %v1286_v1 }
 0x261   : > { %v1444_v33 = vpop.f32.mrb[14].mxu1  ;;  %v718_v37 = vadd.f32 %v1286_v1, %v717_v32 }
 0x262   : > { %v729_v35 = vadd.f32 %v1444_v33, %v1286_v1  ;;  %v720_v36 = vpop.f32.mrb[15].mxu1 }
 0x263   : > { %v721_v38 = vadd.f32 %v1286_v1, %v720_v36 }
 0x264   : > { %v739_v39 = vpack.c.bf16 %v729_v35, %v726_v34 }
 0x265   : > { %v738_v40 = vpack.c.bf16 %v721_v38, %v718_v37 }
 0x266   : > { %751 = vst [vmem:[#allocation2 + $0x38] sm:$0xff] %v739_v39 }
 0x267   : > { %750 = vst [vmem:[#allocation2 + $0x30] sm:$0xff] %v738_v40 }
 0x268 PF: > { %p1295_p3 = scmp.ne.s32.totalorder %s1798_s21, 1 }
 0x269   : > { %v776_v41 = vld [vmem:[#allocation2] sm:$0xff] (!%p1295_p3)  ;;  %v777_v42 = vld [vmem:[#allocation2 + $0x8] sm:$0xff] (!%p1295_p3)  ;;  %v778_v44 = vld [vmem:[#allocation2 + $0x10] sm:$0xff] (!%p1295_p3) }
 0x26a   : > { %755 = sbr.rel (%p1295_p3) target bundleno = 1112 (0x458), region = 68  ;;  %1445 = vmatprep.subr.bf16.mxu0 (!%p1295_p3), %v776_v41  ;;  %v1614_v43 = vld [vmem:[#allocation3] sm:$0xff] (!%p1295_p3)   ;;  %v779_v45 = vld [vmem:[#allocation2 + $0x18] sm:$0xff] (!%p1295_p3)  ;;  %v1623_v48 = vld [vmem:[#allocation9 + $0x8] sm:$0xff] (!%p1295_p3)  }
 0x26b   : > { %1446 = vmatpush3.bf16.msra.mxu0 (!%p1295_p3), %v776_v41  ;;  %1461 = vmatprep.mubr.bf16.mxu0 (!%p1295_p3), %v1614_v43  ;;  %v780_v46 = vld [vmem:[#allocation2 + $0x20] sm:$0xff] (!%p1295_p3)  ;;  %v1624_v49 = vld [vmem:[#allocation9 + $0x10] sm:$0xff] (!%p1295_p3)   ;;  %v781_v50 = vld [vmem:[#allocation2 + $0x28] sm:$0xff] (!%p1295_p3) }
 0x26c   : > { %1447 = vmatprep.subr.bf16.mxu0 (!%p1295_p3), %v777_v42  ;;  %v1622_v47 = vld [vmem:[#allocation9] sm:$0xff] (!%p1295_p3)   ;;  %v1625_v51 = vld [vmem:[#allocation9 + $0x18] sm:$0xff] (!%p1295_p3)   ;;  %v1627_v55 = vld [vmem:[#allocation9 + $0x28] sm:$0xff] (!%p1295_p3)  }
 0x26d   : > { %1477 = vmatprep.subr.bf16.mxu1 (!%p1295_p3), %v1622_v47  ;;  %v1626_v53 = vld [vmem:[#allocation9 + $0x20] sm:$0xff] (!%p1295_p3)   ;;  %v783_v54 = vld [vmem:[#allocation2 + $0x38] sm:$0xff] (!%p1295_p3)  ;;  %v1615_v56 = vld [vmem:[#allocation3 + $0x8] sm:$0xff] (!%p1295_p3)  }
 0x26e   : > { %1478 = vmatpush3.bf16.msra.mxu1 (!%p1295_p3), %v1622_v47  ;;  %v782_v52 = vld [vmem:[#allocation2 + $0x30] sm:$0xff] (!%p1295_p3)  ;;  %v1617_v58 = vld [vmem:[#allocation3 + $0x18] sm:$0xff] (!%p1295_p3)   ;;  %v1618_v59 = vld [vmem:[#allocation3 + $0x20] sm:$0xff] (!%p1295_p3)  }
 0x26f   : > { %1448 = vmatpush3.bf16.msra.mxu0 (!%p1295_p3), %v777_v42  ;;  %1479 = vmatprep.subr.bf16.mxu1 (!%p1295_p3), %v1623_v48  ;;  %v1616_v57 = vld [vmem:[#allocation3 + $0x10] sm:$0xff] (!%p1295_p3)   ;;  %v1619_v60 = vld [vmem:[#allocation3 + $0x28] sm:$0xff] (!%p1295_p3)   ;;  %v1621_v62 = vld [vmem:[#allocation3 + $0x38] sm:$0xff] (!%p1295_p3)  }
 0x270   : > { %1449 = vmatprep.subr.bf16.mxu0 (!%p1295_p3), %v778_v44  ;;  %v1620_v61 = vld [vmem:[#allocation3 + $0x30] sm:$0xff] (!%p1295_p3)   ;;  %v1629_v0 = vld [vmem:[#allocation9 + $0x38] sm:$0xff] (!%p1295_p3)   ;;  %v1304_v41 = vld [vmem:[%s2051_s5] ss:$0 sm:$0xff] (!%p1295_p3) }
 0x271   : > { %v1628_v63 = vld [vmem:[#allocation9 + $0x30] sm:$0xff]  }
 0x272   : > { %1480 = vmatpush3.bf16.msra.mxu1 %v1623_v48 }
 0x273   : > { %1450 = vmatpush3.bf16.msra.mxu0 %v778_v44  ;;  %1481 = vmatprep.subr.bf16.mxu1 %v1624_v49 }
 0x274   : > { %1451 = vmatprep.subr.bf16.mxu0 %v779_v45 }
 0x276   : > { %1482 = vmatpush3.bf16.msra.mxu1 %v1624_v49 }
 0x277   : > { %1452 = vmatpush3.bf16.msra.mxu0 %v779_v45  ;;  %1483 = vmatprep.subr.bf16.mxu1 %v1625_v51 }
 0x278   : > { %1453 = vmatprep.subr.bf16.mxu0 %v780_v46 }
 0x27a   : > { %1484 = vmatpush3.bf16.msra.mxu1 %v1625_v51 }
 0x27b   : > { %1454 = vmatpush3.bf16.msra.mxu0 %v780_v46  ;;  %1485 = vmatprep.subr.bf16.mxu1 %v1626_v53 }
 0x27c   : > { %1455 = vmatprep.subr.bf16.mxu0 %v781_v50 }
 0x27e   : > { %1486 = vmatpush3.bf16.msra.mxu1 %v1626_v53 }
 0x27f   : > { %1456 = vmatpush3.bf16.msra.mxu0 %v781_v50  ;;  %1487 = vmatprep.subr.bf16.mxu1 %v1627_v55 }
 0x280   : > { %1457 = vmatprep.subr.bf16.mxu0 %v782_v52 }
 0x282   : > { %1488 = vmatpush3.bf16.msra.mxu1 %v1627_v55 }
 0x283   : > { %1458 = vmatpush3.bf16.msra.mxu0 %v782_v52  ;;  %1489 = vmatprep.subr.bf16.mxu1 %v1628_v63 }
 0x284   : > { %1459 = vmatprep.subr.bf16.mxu0 %v783_v54 }
 0x286   : > { %1490 = vmatpush3.bf16.msra.mxu1 %v1628_v63 }
 0x287   : > { %1460 = vmatpush3.bf16.msra.mxu0 %v783_v54  ;;  %1491 = vmatprep.subr.bf16.mxu1 %v1629_v0 }
 0x28a   : > { %1462 = vmatmul.mubr.bf16.vlgmr.msra.gmra.mrb[0].mxu0 %v1615_v56  ;;  %1492 = vmatpush3.bf16.msra.mxu1 %v1629_v0 }
 0x28b   : > { %1465 = vmatprep.mubr.bf16.mxu0 %v1616_v57 }
 0x292   : > { %1466 = vmatmul.mubr.bf16.gmra.mrb[4].mxu0 %v1617_v58 }
 0x293   : > { %1469 = vmatprep.mubr.bf16.mxu0 %v1618_v59 }
 0x29a   : > { %1470 = vmatmul.mubr.bf16.gmra.mrb[8].mxu0 %v1619_v60 }
 0x29b   : > { %1473 = vmatprep.mubr.bf16.mxu0 %v1620_v61 }
 0x2a2   : > { %1474 = vmatmul.mubr.bf16.gmra.mrb[12].mxu0 %v1621_v62 }
 0x35d   : > { %v1463_v1 = vpop.f32.mrb[0].mxu0 }
 0x35e   : > { %v866_v2 = vpop.f32.mrb[1].mxu0  ;;  %v931_v4 = vmax.f32 %v1463_v1, 0.0 }
 0x35f   : > { %v1464_v3 = vpop.f32.mrb[2].mxu0  ;;  %v929_v7 = vmax.f32 %v866_v2, 0.0 }
 0x360   : > { %v932_v5 = vmax.f32 %v1464_v3, 0.0  ;;  %v869_v6 = vpop.f32.mrb[3].mxu0 }
 0x361   : > { %v930_v8 = vmax.f32 %v869_v6, 0.0 }
 0x362   : > { %v946_v9 = vpack.c.bf16 %v932_v5, %v931_v4 }
 0x363   : > { %v945_v10 = vpack.c.bf16 %v930_v8, %v929_v7 }
 0x365   : > { %v1467_v11 = vpop.f32.mrb[4].mxu0  ;;  %1493 = vmatprep.mubr.bf16.mxu1 %v945_v10 }
 0x366   : > { %v882_v12 = vpop.f32.mrb[5].mxu0  ;;  %1494 = vmatmul.mubr.bf16.vlgmr.msra.gmra.mrb[0].mxu1 %v946_v9  ;;  %v935_v14 = vmax.f32 %v1467_v11, 0.0 }
 0x367   : > { %v1468_v13 = vpop.f32.mrb[6].mxu0  ;;  %v933_v17 = vmax.f32 %v882_v12, 0.0 }
 0x368   : > { %v936_v15 = vmax.f32 %v1468_v13, 0.0  ;;  %v885_v16 = vpop.f32.mrb[7].mxu0 }
 0x369   : > { %v934_v18 = vmax.f32 %v885_v16, 0.0 }
 0x36a   : > { %v948_v19 = vpack.c.bf16 %v936_v15, %v935_v14 }
 0x36b   : > { %v947_v20 = vpack.c.bf16 %v934_v18, %v933_v17 }
 0x36d   : > { %v1471_v21 = vpop.f32.mrb[8].mxu0  ;;  %1497 = vmatprep.mubr.bf16.mxu1 %v947_v20 }
 0x36e   : > { %v898_v22 = vpop.f32.mrb[9].mxu0  ;;  %1498 = vmatmul.mubr.bf16.gmra.mrb[4].mxu1 %v948_v19  ;;  %v939_v24 = vmax.f32 %v1471_v21, 0.0 }
 0x36f   : > { %v1472_v23 = vpop.f32.mrb[10].mxu0  ;;  %v937_v27 = vmax.f32 %v898_v22, 0.0 }
 0x370   : > { %v940_v25 = vmax.f32 %v1472_v23, 0.0  ;;  %v901_v26 = vpop.f32.mrb[11].mxu0 }
 0x371   : > { %v938_v28 = vmax.f32 %v901_v26, 0.0 }
 0x372   : > { %v950_v29 = vpack.c.bf16 %v940_v25, %v939_v24 }
 0x373   : > { %v949_v30 = vpack.c.bf16 %v938_v28, %v937_v27 }
 0x375   : > { %v1475_v31 = vpop.f32.mrb[12].mxu0  ;;  %1501 = vmatprep.mubr.bf16.mxu1 %v949_v30 }
 0x376   : > { %v914_v32 = vpop.f32.mrb[13].mxu0  ;;  %1502 = vmatmul.mubr.bf16.gmra.mrb[8].mxu1 %v950_v29  ;;  %v943_v34 = vmax.f32 %v1475_v31, 0.0 }
 0x377   : > { %v1476_v33 = vpop.f32.mrb[14].mxu0  ;;  %v941_v37 = vmax.f32 %v914_v32, 0.0 }
 0x378   : > { %v944_v35 = vmax.f32 %v1476_v33, 0.0  ;;  %v917_v36 = vpop.f32.mrb[15].mxu0 }
 0x379   : > { %v942_v38 = vmax.f32 %v917_v36, 0.0 }
 0x37a   : > { %v952_v39 = vpack.c.bf16 %v944_v35, %v943_v34 }
 0x37b   : > { %v951_v40 = vpack.c.bf16 %v942_v38, %v941_v37 }
 0x37d   : > { %1505 = vmatprep.mubr.bf16.mxu1 %v951_v40 }
 0x37e   : > { %1506 = vmatmul.mubr.bf16.gmra.mrb[12].mxu1 %v952_v39 }
 0x439   : > { %v1495_v42 = vpop.f32.mrb[0].mxu1 }
 0x43a   : > { %v1067_v43 = vadd.f32 %v1495_v42, %v1304_v41  ;;  %v1058_v44 = vpop.f32.mrb[1].mxu1 }
 0x43b   : > { %v1059_v45 = vadd.f32 %v1304_v41, %v1058_v44  ;;  %v1496_v46 = vpop.f32.mrb[2].mxu1 }
 0x43c   : > { %1123 = vst [vmem:[#allocation11 + $0x10] sm:$0xff] %v1067_v43  ;;  %v1070_v47 = vadd.f32 %v1496_v46, %v1304_v41  ;;  %v1061_v48 = vpop.f32.mrb[3].mxu1 }
 0x43d   : > { %1121 = vst [vmem:[#allocation11] sm:$0xff] %v1059_v45  ;;  %v1062_v49 = vadd.f32 %v1304_v41, %v1061_v48 }
 0x43e   : > { %1124 = vst [vmem:[#allocation11 + $0x18] sm:$0xff] %v1070_v47 }
 0x43f   : > { %1122 = vst [vmem:[#allocation11 + $0x8] sm:$0xff] %v1062_v49 }
 0x441   : > { %v1499_v50 = vpop.f32.mrb[4].mxu1 }
 0x442   : > { %v1083_v51 = vadd.f32 %v1499_v50, %v1304_v41  ;;  %v1074_v52 = vpop.f32.mrb[5].mxu1 }
 0x443   : > { %v1075_v53 = vadd.f32 %v1304_v41, %v1074_v52  ;;  %v1500_v54 = vpop.f32.mrb[6].mxu1 }
 0x444   : > { %1127 = vst [vmem:[#allocation11 + $0x30] sm:$0xff] %v1083_v51  ;;  %v1086_v55 = vadd.f32 %v1500_v54, %v1304_v41  ;;  %v1077_v56 = vpop.f32.mrb[7].mxu1 }
 0x445   : > { %1125 = vst [vmem:[#allocation11 + $0x20] sm:$0xff] %v1075_v53  ;;  %v1078_v57 = vadd.f32 %v1304_v41, %v1077_v56 }
 0x446   : > { %1128 = vst [vmem:[#allocation11 + $0x38] sm:$0xff] %v1086_v55 }
 0x447   : > { %1126 = vst [vmem:[#allocation11 + $0x28] sm:$0xff] %v1078_v57 }
 0x449   : > { %v1503_v58 = vpop.f32.mrb[8].mxu1 }
 0x44a   : > { %v1099_v59 = vadd.f32 %v1503_v58, %v1304_v41  ;;  %v1090_v60 = vpop.f32.mrb[9].mxu1 }
 0x44b   : > { %v1091_v61 = vadd.f32 %v1304_v41, %v1090_v60  ;;  %v1504_v62 = vpop.f32.mrb[10].mxu1 }
 0x44c   : > { %1131 = vst [vmem:[#allocation11 + $0x50] sm:$0xff] %v1099_v59  ;;  %v1102_v63 = vadd.f32 %v1504_v62, %v1304_v41  ;;  %v1093_v0 = vpop.f32.mrb[11].mxu1 }
 0x44d   : > { %1129 = vst [vmem:[#allocation11 + $0x40] sm:$0xff] %v1091_v61  ;;  %v1094_v1 = vadd.f32 %v1304_v41, %v1093_v0 }
 0x44e   : > { %1132 = vst [vmem:[#allocation11 + $0x58] sm:$0xff] %v1102_v63 }
 0x44f   : > { %1130 = vst [vmem:[#allocation11 + $0x48] sm:$0xff] %v1094_v1 }
 0x451   : > { %v1507_v2 = vpop.f32.mrb[12].mxu1 }
 0x452   : > { %v1115_v3 = vadd.f32 %v1507_v2, %v1304_v41  ;;  %v1106_v4 = vpop.f32.mrb[13].mxu1 }
 0x453   : > { %v1107_v5 = vadd.f32 %v1304_v41, %v1106_v4  ;;  %v1508_v6 = vpop.f32.mrb[14].mxu1 }
 0x454   : > { %1135 = vst [vmem:[#allocation11 + $0x70] sm:$0xff] %v1115_v3  ;;  %v1118_v7 = vadd.f32 %v1508_v6, %v1304_v41  ;;  %v1109_v8 = vpop.f32.mrb[15].mxu1 }
 0x455   : > { %1133 = vst [vmem:[#allocation11 + $0x60] sm:$0xff] %v1107_v5  ;;  %v1110_v9 = vadd.f32 %v1304_v41, %v1109_v8 }
 0x456   : > { %1136 = vst [vmem:[#allocation11 + $0x78] sm:$0xff] %v1118_v7 }
 0x457   : > { %1134 = vst [vmem:[#allocation11 + $0x68] sm:$0xff] %v1110_v9 }
 0x458 PF: > { %p2012_p6 = scmp.eq.s32.totalorder %s1257_s24, 1  ;;  %s1814_s18 = smov [#allocation11]  }
 0x459   : > { %s1152_s19 = sshll.u32 %s1814_s18, 4  ;;  %s1153_s19 = int_to_ptr.vmem [resolvable:$true] %s1152_s19 }
 0x45a   : > { %s1742_s20 = scalar_lea.vmem %s1153_s19, 2048  ;;  %s1748_s25 = scalar_lea.vmem %s1153_s19, 4096 }
 0x45b   : > { %p1743_p9 = scmp.ne.s32.totalorder %s1153_s19, %s1742_s20  ;;  %p1749_p12 = scmp.lt.s32.totalorder %s1153_s19, %s1153_s19 }
 0x45c   : > { %p1750_p13 = scmp.lt.s32.totalorder %s1748_s25, %s1742_s20 }
 0x45d   : > { %p1744_p10 = pnand %p1743_p9, %p2012_p6 }
 0x45e   : > { %p1751_p0 = por %p1750_p13, %p1749_p12 }
 0x45f   : > { %p1745_p11 = pneg %p1744_p10 }
 0x461   : > { %p1752_p1 = pnand %p1751_p0, %p1745_p11 }
 0x463   : > { %1755 = shalt.err (!%p1752_p1)
}
 0x464   : > { %s1756_s9 = scalar_lea.hbm %s2052_s6, 2048 }
 0x465   : > { %p1757_p4 = scmp.ne.s32.totalorder %s2052_s6, %s1756_s9  ;;  %p1762_p8 = scmp.lt.u32.totalorder %s1756_s9, %s2052_s6 }
 0x467   : > { %p1758_p7 = pnand %p1757_p4, %p2012_p6 }
 0x469   : > { %p1759_p2 = pneg %p1758_p7 }
 0x46b   : > { %p1764_p5 = pnand %p1762_p8, %p1759_p2 }
 0x46d   : > { %1767 = shalt.err (!%p1764_p5)
}
 0x46e   : > { %s1815_s17 = smov 128   ;;  %s1816_s29 = smov 8  }
 0x46f   : > { %1526 = dma.vmem_to_hbm [thread:$0]  (%p2012_p6), %s1153_s19, 2048, %s2052_s6, [#allocation5], %s1815_s17, %s1815_s17, %s1816_s29  }
 0x470 PF: > { %p1555_p3 = scmp.ge.s32.totalorder %s1806_s23, 2  ;;  %s2065_s10 = sadd.s32 4294967294, %s1806_s23  }
 0x471   : > { %p1556_p9 = scmp.eq.s32.totalorder %s2065_s10, 1 }
 0x473   : > { %p1543_p10 = pnand %p1556_p9, %p1555_p3 }
 0x475   : > { %1793 = dma.done.wait (!%p1543_p10), [#allocation5], 2048  }
 0x476   : > { %1795 = vsyncadd (!%p1543_p10), [#allocation5], 4294965248  ;;  %s22_s23 = sadd.s32 1, %s1806_s23   ;;  %s2066_s21 = smov %s1802_s22 }
 0x477   : > { %p19_p11 = scmp.ge.s32.totalorder %s22_s23, 4   ;;  %s2067_s22 = smov %s2069_s7 }
 0x479   :  { %21 = sbr.rel (!%p19_p11) target bundleno = 6 (0x6), region = 104 }
 0x480   :  { %1173 = vsyncpa [#allocation4], 1 }
 0x481   :  { %1175 = vsyncpa [#allocation4 + $0x1], 1 }
 0x482   :  { %1176 = vsyncpa [#allocation7], 1 }
 0x483   :  { %1177 = vsyncpa [#allocation10], 1 }
 0x484   :  { %1178 = vsyncpa [#allocation5], 1 }
 0x485   :  { %1180 = vsyncpa [#allocation5 + $0x1], 1 }

</bundles_post_ra>
